<compile_context>
chip_gen: v7x
topology: tpu7x:2x2x1
jax: 0.10.0
libtpu: 0.0.40
codegen_flags: <defaults>
</compile_context>

<pallas_src>
import functools
import math

import jax
import jax.numpy as jnp
from jax.experimental import pallas as pl
from jax.experimental.pallas import tpu as pltpu


# ----------------------------- fused forward kernel ---------------------------------------
def _fused_attention_kernel(
    q_ref, k_ref, v_ref,
    wq_ref, bq_ref, wk_ref, bk_ref, wv_ref, bv_ref, wf_ref, bf_ref,
    x_ref, *rest,
    n_heads, scale, pre_floor_dtype, post_floor_dtype, emit_attention,
):
    f32 = jnp.float32
    if emit_attention:
        a_ref, q_s, k_s, v_s = rest
    else:
        a_ref = None
        q_s, k_s, v_s = rest

    seq_len, _ = q_s.shape
    head_len = seq_len // n_heads

    def proj(x_in_ref, w_ref, b_ref, out_s):
        x = x_in_ref[...].astype(pre_floor_dtype)
        w = w_ref[...].astype(pre_floor_dtype)
        out_s[...] = jnp.dot(x, w, preferred_element_type=f32) + b_ref[...].astype(f32)

    # Fused Q/K/V projections: one (S,Dm)@(Dm,Dm) MXU matmul each (all heads at once ->
    # no small-M padding), accumulated in f32 VMEM scratch.
    # TODO(synk): for very tight v7x VMEM budgets the projections could be written back
    # into the input refs themselves (each batch block is visited exactly once).
    proj(q_ref, wq_ref, bq_ref, q_s)
    proj(k_ref, wk_ref, bk_ref, k_s)
    proj(v_ref, wv_ref, bv_ref, v_s)

    # Per-head attention.  Head h owns interleaved rows {h, h+H, ...} (PyTorch
    # `view(B,-1,H,hid).permute(0,2,1,3)` semantics).  Its attention@V result is staged
    # back into q_s at the SAME rows: those Q rows are dead after `qk`, and the staged
    # row order (s = l*H + h) is exactly the final output row order produced by the
    # reference permute+view head merge, so no transpose is needed afterwards.
    for h in range(n_heads):  # static unroll: n_heads is small & known at trace time
        # TODO(synk): for n_heads >= ~8 switch to lax.fori_loop(..., unroll=True) and
        # deinterleave heads up front to avoid many sublane-strided slices.
        rows = pl.ds(h, head_len, stride=n_heads)
        qh = q_s[rows, :]
        kh = k_s[rows, :]
        vh = v_s[rows, :]

        # energy = floor((Q K^T) / scale): float floor-division.  Exact f32 divide kept
        # (a *inv_scale multiply could shift floor boundaries by 1 ulp).
        qk = jax.lax.dot_general(
            qh.astype(pre_floor_dtype), kh.astype(pre_floor_dtype),
            (((1,), (1,)), ((), ())), preferred_element_type=f32)
        energy = jnp.floor(qk / scale)
        # TODO(synk): optional `mask` branch not lowered (forward exercised with mask=None).

        # Numerically-stable softmax with an exact normalisation (rows sum to 1).
        m = jnp.max(energy, axis=-1, keepdims=True)
        e = jnp.exp(energy - m)
        attn = e * (1.0 / jnp.sum(e, axis=-1, keepdims=True))
        if emit_attention:
            a_ref[h] = attn.astype(a_ref.dtype)

        # attention @ V is downstream of the floor -> bf16 MXU operands are safe; f32 acc.
        xh = jnp.dot(attn.astype(post_floor_dtype), vh.astype(post_floor_dtype),
                     preferred_element_type=f32)
        q_s[rows, :] = xh  # strided staging store into the dead Q rows (final row order)

    # One batched output projection over all heads/rows: a single (S,Dm)@(Dm,Dm) matmul
    # (full-M MXU utilisation, wf pushed once) and a single lane-dense contiguous store.
    out = jnp.dot(q_s[...].astype(post_floor_dtype), wf_ref[...].astype(post_floor_dtype),
                  preferred_element_type=f32) + bf_ref[...].astype(f32)
    x_ref[...] = out.astype(x_ref.dtype)


# ----------------------------- wrapper -----------------------------------------------------
def _default_vmem_limit_bytes():
    # Per-generation VMEM budget (review): ~100 MiB on 128-MiB parts (v5e/v6e), 48 MiB on
    # v7x (64 MiB physical per TC).  Conservative 48 MiB for anything else.
    try:
        kind = jax.devices()[0].device_kind.lower()
    except Exception:
        kind = ""
    if "v7" in kind or "7x" in kind:
        return 48 * 1024 * 1024
    if "v5 lite" in kind or "v5e" in kind or "v6" in kind:
        return 100 * 1024 * 1024
    return 48 * 1024 * 1024


def fused_self_attention(query, key, value, wq, bq, wk, bk, wv, bv, wf, bf, *,
                         n_heads, scale,
                         pre_floor_dtype=jnp.float32,
                         post_floor_dtype=jnp.bfloat16,
                         attention_dtype=jnp.float32,
                         return_attention=True,
                         single_buffer_weights=True,
                         vmem_limit_bytes=None):
    B, S, Dm = query.shape
    assert S % n_heads == 0, "sequence length must be divisible by n_heads"
    L = S // n_heads
    if vmem_limit_bytes is None:
        vmem_limit_bytes = _default_vmem_limit_bytes()

    kern = functools.partial(
        _fused_attention_kernel, n_heads=n_heads, scale=scale,
        pre_floor_dtype=pre_floor_dtype, post_floor_dtype=post_floor_dtype,
        emit_attention=return_attention)

    def call(use_single_buffer_weights):
        wkwargs = {}
        if use_single_buffer_weights:
            # Weights/biases have constant index_maps (never re-fetched across the batch
            # grid); single-buffer them so they don't pay 2x VMEM (v7x: 64 MiB budget).
            wkwargs = dict(pipeline_mode=pl.Buffered(1))
        seq_spec = pl.BlockSpec((None, S, Dm), lambda b: (b, 0, 0))
        w_spec = pl.BlockSpec((Dm, Dm), lambda b: (0, 0), **wkwargs)
        bias_spec = pl.BlockSpec((1, Dm), lambda b: (0, 0), **wkwargs)

        if return_attention:
            out_shape = (jax.ShapeDtypeStruct((B, S, Dm), query.dtype),
                         jax.ShapeDtypeStruct((B, n_heads, L, L), attention_dtype))
            out_specs = (pl.BlockSpec((None, S, Dm), lambda b: (b, 0, 0)),
                         pl.BlockSpec((None, n_heads, L, L), lambda b: (b, 0, 0, 0)))
        else:
            out_shape = jax.ShapeDtypeStruct((B, S, Dm), query.dtype)
            out_specs = pl.BlockSpec((None, S, Dm), lambda b: (b, 0, 0))

        # TODO(synk): for B < 2 on v7x, add a second "parallel" grid axis (head-group or
        # sequence split) so both TensorCores are fed.
        return pl.pallas_call(
            kern,
            out_shape=out_shape,
            grid=(B,),
            in_specs=[seq_spec, seq_spec, seq_spec,
                      w_spec, bias_spec, w_spec, bias_spec,
                      w_spec, bias_spec, w_spec, bias_spec],
            out_specs=out_specs,
            scratch_shapes=[
                pltpu.VMEM((S, Dm), jnp.float32),   # Q proj; reused to stage attn@V rows
                pltpu.VMEM((S, Dm), jnp.float32),   # K proj
                pltpu.VMEM((S, Dm), jnp.float32),   # V proj
            ],
            compiler_params=pltpu.CompilerParams(
                dimension_semantics=("parallel",),   # megacore: shard the batch over TCs
                vmem_limit_bytes=vmem_limit_bytes,
            ),
        )(query, key, value, wq, bq, wk, bk, wv, bv, wf, bf)

    if single_buffer_weights:
        try:
            outs = call(True)
        except Exception:
            # TODO(synk): this JAX build rejected pipeline_mode=pl.Buffered(1) for the
            # weight blocks; fall back to default double-buffering.
            outs = call(False)
    else:
        outs = call(False)

    if return_attention:
        x, attention = outs
    else:
        x, attention = outs, None
    return x, attention


# ----------------------------- module wrapper ----------------------------------------------
class SelfAttentionPallas:
    """Pallas-TPU port of the PyTorch SelfAttention module (single fused kernel)."""

    def __init__(self, hid_dim, n_heads, dropout, key, dtype=jnp.float32,
                 post_floor_dtype=jnp.bfloat16, attention_dtype=jnp.float32):
        assert hid_dim % n_heads == 0
        self.hid_dim = hid_dim
        self.n_heads = n_heads
        self.scale = math.sqrt(hid_dim // n_heads)
        self.post_floor_dtype = post_floor_dtype
        self.attention_dtype = attention_dtype
        # TODO(synk): dropout is constructed but never applied in the reference forward;
        # kept only for signature parity (no-op).
        self.dropout = dropout

        ks = jax.random.split(key, 8)
        bound = 1.0 / math.sqrt(hid_dim)  # nn.Linear default init range

        def u(k, shape):
            return jax.random.uniform(k, shape, dtype, -bound, bound)

        # stored as (in, out) so the kernel computes x @ W + b
        self.wq, self.bq = u(ks[0], (hid_dim, hid_dim)), u(ks[1], (1, hid_dim))
        self.wk, self.bk = u(ks[2], (hid_dim, hid_dim)), u(ks[3], (1, hid_dim))
        self.wv, self.bv = u(ks[4], (hid_dim, hid_dim)), u(ks[5], (1, hid_dim))
        self.wf, self.bf = u(ks[6], (hid_dim, hid_dim)), u(ks[7], (1, hid_dim))

    def __call__(self, query, key, value, mask=None, return_attention=True):
        if mask is not None:
            # TODO(synk): mask path not implemented (reference forward used with mask=None)
            raise NotImplementedError("mask not supported")
        return fused_self_attention(
            query, key, value,
            self.wq, self.bq, self.wk, self.bk, self.wv, self.bv, self.wf, self.bf,
            n_heads=self.n_heads, scale=self.scale,
            post_floor_dtype=self.post_floor_dtype,
            attention_dtype=self.attention_dtype,
            return_attention=return_attention)


# ----------------------------- pure-JAX reference (for validation) -------------------------
def _reference_forward(query, key, value, wq, bq, wk, bk, wv, bv, wf, bf, n_heads, scale):
    B, S, Dm = query.shape
    Q = query @ wq + bq
    K = key @ wk + bk
    V = value @ wv + bv
    Qh = Q.reshape(B, -1, n_heads, Dm).transpose(0, 2, 1, 3)
    Kh = K.reshape(B, -1, n_heads, Dm).transpose(0, 2, 1, 3)
    Vh = V.reshape(B, -1, n_heads, Dm).transpose(0, 2, 1, 3)
    scores = jnp.einsum("bhqd,bhkd->bhqk", Qh, Kh) / scale   # pre-floor scores
    attn = jax.nn.softmax(jnp.floor(scores), axis=-1)
    x = jnp.einsum("bhqk,bhkd->bhqd", attn, Vh)
    x = x.transpose(0, 2, 1, 3).reshape(B, -1, Dm)
    return x @ wf + bf, attn, scores


def _check_against_reference(x, attn, x_ref, attn_ref, scores_ref, n_heads,
                             *, atol=2e-2, rtol=2e-2, boundary_margin=0.1):
    """Compare kernel vs reference, skipping rows whose pre-floor scores sit within
    `boundary_margin` of an integer: floor() is discontinuous there, so benign
    matmul-precision / accumulation-order differences flip whole integers and no
    elementwise tolerance is meaningful for those rows."""
    B, H, L, _ = attn_ref.shape
    S = H * L
    frac = scores_ref - jnp.floor(scores_ref)
    dist = jnp.minimum(frac, 1.0 - frac)
    row_safe = jnp.all(dist > boundary_margin, axis=-1)             # (B, H, L)
    assert bool(jnp.any(row_safe)), "degenerate test: every row near a floor boundary"

    a_ok = jnp.abs(attn.astype(jnp.float32) - attn_ref) <= (atol + rtol * jnp.abs(attn_ref))
    assert bool(jnp.all(jnp.where(row_safe[..., None], a_ok, True)))

    # attention row (b, h, l) produces output row s = l*H + h (PyTorch head merge).
    xrow_safe = row_safe.transpose(0, 2, 1).reshape(B, S)
    x_ok = jnp.abs(x - x_ref) <= (atol + rtol * jnp.abs(x_ref))
    assert bool(jnp.all(jnp.where(xrow_safe[:, :, None], x_ok, True)))


if __name__ == "__main__":
    def run_case(hid_dim, n_heads, B, S, case_key):
        kp, kq, kk, kv = jax.random.split(case_key, 4)
        module = SelfAttentionPallas(hid_dim, n_heads, 0.1, kp)
        query = jax.random.normal(kq, (B, S, hid_dim), jnp.float32)
        key_in = jax.random.normal(kk, (B, S, hid_dim), jnp.float32)
        value = jax.random.normal(kv, (B, S, hid_dim), jnp.float32)

        x, attention = module(query, key_in, value)
        jax.block_until_ready((x, attention))

        L = S // n_heads
        assert x.shape == (B, S, hid_dim)
        assert attention.shape == (B, n_heads, L, L)
        assert bool(jnp.all(jnp.isfinite(x))) and bool(jnp.all(jnp.isfinite(attention)))

        x_ref, a_ref, scores = _reference_forward(
            query, key_in, value,
            module.wq, module.bq, module.wk, module.bk, module.wv, module.bv,
            module.wf, module.bf, n_heads, module.scale)
        _check_against_reference(x, attention, x_ref, a_ref, scores, n_heads)

        # The attention-probabilities output is optional (review): x must not change.
        x_only, attn_none = module(query, key_in, value, return_attention=False)
        jax.block_until_ready(x_only)
        assert attn_none is None
        assert bool(jnp.allclose(x_only, x, atol=1e-5, rtol=1e-5))

    root = jax.random.PRNGKey(0)
    k_small, k_big = jax.random.split(root)
    run_case(hid_dim=32, n_heads=4, B=2, S=8, case_key=k_small)    # small sanity shapes
    run_case(hid_dim=128, n_heads=4, B=2, S=32, case_key=k_big)    # lane-full Dm, L=8

    print("KERNEL_OK")
</pallas_src>

<mosaic_0001>
module attributes {stable_mosaic.version = 11 : i64} {
  func.func @_fused_attention_kernel(%arg0: i32, %arg1: memref<1x8x32xf32, #tpu.memory_space<vmem>>, %arg2: memref<1x8x32xf32, #tpu.memory_space<vmem>>, %arg3: memref<1x8x32xf32, #tpu.memory_space<vmem>>, %arg4: memref<32x32xf32, #tpu.memory_space<vmem>>, %arg5: memref<1x32xf32, #tpu.memory_space<vmem>>, %arg6: memref<32x32xf32, #tpu.memory_space<vmem>>, %arg7: memref<1x32xf32, #tpu.memory_space<vmem>>, %arg8: memref<32x32xf32, #tpu.memory_space<vmem>>, %arg9: memref<1x32xf32, #tpu.memory_space<vmem>>, %arg10: memref<32x32xf32, #tpu.memory_space<vmem>>, %arg11: memref<1x32xf32, #tpu.memory_space<vmem>>, %arg12: memref<1x8x32xf32, #tpu.memory_space<vmem>>, %arg13: memref<1x4x2x2xf32, #tpu.memory_space<vmem>>, %arg14: memref<8x32xf32, #tpu.memory_space<vmem>>, %arg15: memref<8x32xf32, #tpu.memory_space<vmem>>, %arg16: memref<8x32xf32, #tpu.memory_space<vmem>>) attributes {dimension_semantics = [#tpu.dimension_semantics<parallel>], iteration_bounds = array<i64: 2>, scalar_prefetch = 0 : i64, scratch_operands = 3 : i64, tpu.core_type = #tpu.core_type<tc>, window_params = [{transform_indices = @transform_0, window_bounds = array<i64: 1, 8, 32>}, {transform_indices = @transform_1, window_bounds = array<i64: 1, 8, 32>}, {transform_indices = @transform_2, window_bounds = array<i64: 1, 8, 32>}, {pipeline_mode = #tpu.pipeline_mode<synchronous>, transform_indices = @transform_3, window_bounds = array<i64: 32, 32>}, {pipeline_mode = #tpu.pipeline_mode<synchronous>, transform_indices = @transform_4, window_bounds = array<i64: 1, 32>}, {pipeline_mode = #tpu.pipeline_mode<synchronous>, transform_indices = @transform_5, window_bounds = array<i64: 32, 32>}, {pipeline_mode = #tpu.pipeline_mode<synchronous>, transform_indices = @transform_6, window_bounds = array<i64: 1, 32>}, {pipeline_mode = #tpu.pipeline_mode<synchronous>, transform_indices = @transform_7, window_bounds = array<i64: 32, 32>}, {pipeline_mode = #tpu.pipeline_mode<synchronous>, transform_indices = @transform_8, window_bounds = array<i64: 1, 32>}, {pipeline_mode = #tpu.pipeline_mode<synchronous>, transform_indices = @transform_9, window_bounds = array<i64: 32, 32>}, {pipeline_mode = #tpu.pipeline_mode<synchronous>, transform_indices = @transform_10, window_bounds = array<i64: 1, 32>}, {transform_indices = @transform_11, window_bounds = array<i64: 1, 8, 32>}, {transform_indices = @transform_12, window_bounds = array<i64: 1, 4, 2, 2>}]} {
    %c0 = arith.constant 0 : index
    %c0_0 = arith.constant 0 : index
    %c0_1 = arith.constant 0 : index
    %0 = vector.load %arg1[%c0, %c0_0, %c0_1] : memref<1x8x32xf32, #tpu.memory_space<vmem>>, vector<1x8x32xf32>
    %1 = vector.shape_cast %0 : vector<1x8x32xf32> to vector<8x32xf32>
    %c0_2 = arith.constant 0 : index
    %c0_3 = arith.constant 0 : index
    %2 = vector.load %arg4[%c0_2, %c0_3] : memref<32x32xf32, #tpu.memory_space<vmem>>, vector<32x32xf32>
    %cst = arith.constant dense<0.000000e+00> : vector<8x32xf32>
    %3 = tpu.matmul %1, %2, %cst {dimension_numbers = #tpu.dot_dimension_numbers<[1], [0], [0], [1], [0, 0, 1, 1], [], []>} : vector<8x32xf32>, vector<32x32xf32>, vector<8x32xf32> -> vector<8x32xf32>
    %c0_4 = arith.constant 0 : index
    %c0_5 = arith.constant 0 : index
    %4 = vector.load %arg5[%c0_4, %c0_5] : memref<1x32xf32, #tpu.memory_space<vmem>>, vector<1x32xf32>
    %5 = vector.broadcast %4 : vector<1x32xf32> to vector<8x32xf32>
    %6 = arith.addf %3, %5 : vector<8x32xf32>
    %c0_6 = arith.constant 0 : index
    %c0_7 = arith.constant 0 : index
    %7 = vector.load %arg14[%c0_6, %c0_7] : memref<8x32xf32, #tpu.memory_space<vmem>>, vector<8x32xf32>
    tpu.vector_store %arg14[%c0_6, %c0_7], %6 {strides = array<i32>} : memref<8x32xf32, #tpu.memory_space<vmem>>, vector<8x32xf32>,
    %c0_8 = arith.constant 0 : index
    %c0_9 = arith.constant 0 : index
    %c0_10 = arith.constant 0 : index
    %8 = vector.load %arg2[%c0_8, %c0_9, %c0_10] : memref<1x8x32xf32, #tpu.memory_space<vmem>>, vector<1x8x32xf32>
    %9 = vector.shape_cast %8 : vector<1x8x32xf32> to vector<8x32xf32>
    %c0_11 = arith.constant 0 : index
    %c0_12 = arith.constant 0 : index
    %10 = vector.load %arg6[%c0_11, %c0_12] : memref<32x32xf32, #tpu.memory_space<vmem>>, vector<32x32xf32>
    %cst_13 = arith.constant dense<0.000000e+00> : vector<8x32xf32>
    %11 = tpu.matmul %9, %10, %cst_13 {dimension_numbers = #tpu.dot_dimension_numbers<[1], [0], [0], [1], [0, 0, 1, 1], [], []>} : vector<8x32xf32>, vector<32x32xf32>, vector<8x32xf32> -> vector<8x32xf32>
    %c0_14 = arith.constant 0 : index
    %c0_15 = arith.constant 0 : index
    %12 = vector.load %arg7[%c0_14, %c0_15] : memref<1x32xf32, #tpu.memory_space<vmem>>, vector<1x32xf32>
    %13 = vector.broadcast %12 : vector<1x32xf32> to vector<8x32xf32>
    %14 = arith.addf %11, %13 : vector<8x32xf32>
    %c0_16 = arith.constant 0 : index
    %c0_17 = arith.constant 0 : index
    %15 = vector.load %arg15[%c0_16, %c0_17] : memref<8x32xf32, #tpu.memory_space<vmem>>, vector<8x32xf32>
    tpu.vector_store %arg15[%c0_16, %c0_17], %14 {strides = array<i32>} : memref<8x32xf32, #tpu.memory_space<vmem>>, vector<8x32xf32>,
    %c0_18 = arith.constant 0 : index
    %c0_19 = arith.constant 0 : index
    %c0_20 = arith.constant 0 : index
    %16 = vector.load %arg3[%c0_18, %c0_19, %c0_20] : memref<1x8x32xf32, #tpu.memory_space<vmem>>, vector<1x8x32xf32>
    %17 = vector.shape_cast %16 : vector<1x8x32xf32> to vector<8x32xf32>
    %c0_21 = arith.constant 0 : index
    %c0_22 = arith.constant 0 : index
    %18 = vector.load %arg8[%c0_21, %c0_22] : memref<32x32xf32, #tpu.memory_space<vmem>>, vector<32x32xf32>
    %cst_23 = arith.constant dense<0.000000e+00> : vector<8x32xf32>
    %19 = tpu.matmul %17, %18, %cst_23 {dimension_numbers = #tpu.dot_dimension_numbers<[1], [0], [0], [1], [0, 0, 1, 1], [], []>} : vector<8x32xf32>, vector<32x32xf32>, vector<8x32xf32> -> vector<8x32xf32>
    %c0_24 = arith.constant 0 : index
    %c0_25 = arith.constant 0 : index
    %20 = vector.load %arg9[%c0_24, %c0_25] : memref<1x32xf32, #tpu.memory_space<vmem>>, vector<1x32xf32>
    %21 = vector.broadcast %20 : vector<1x32xf32> to vector<8x32xf32>
    %22 = arith.addf %19, %21 : vector<8x32xf32>
    %c0_26 = arith.constant 0 : index
    %c0_27 = arith.constant 0 : index
    %23 = vector.load %arg16[%c0_26, %c0_27] : memref<8x32xf32, #tpu.memory_space<vmem>>, vector<8x32xf32>
    tpu.vector_store %arg16[%c0_26, %c0_27], %22 {strides = array<i32>} : memref<8x32xf32, #tpu.memory_space<vmem>>, vector<8x32xf32>,
    %c0_28 = arith.constant 0 : index
    %c0_29 = arith.constant 0 : index
    %24 = tpu.strided_load %arg14[%c0_28, %c0_29] {strides = array<i32: 4, 1>} : memref<8x32xf32, #tpu.memory_space<vmem>>, vector<2x32xf32>
    %c0_30 = arith.constant 0 : index
    %c0_31 = arith.constant 0 : index
    %25 = tpu.strided_load %arg15[%c0_30, %c0_31] {strides = array<i32: 4, 1>} : memref<8x32xf32, #tpu.memory_space<vmem>>, vector<2x32xf32>
    %c0_32 = arith.constant 0 : index
    %c0_33 = arith.constant 0 : index
    %26 = tpu.strided_load %arg16[%c0_32, %c0_33] {strides = array<i32: 4, 1>} : memref<8x32xf32, #tpu.memory_space<vmem>>, vector<2x32xf32>
    %cst_34 = arith.constant dense<0.000000e+00> : vector<2x2xf32>
    %27 = tpu.matmul %24, %25, %cst_34 {dimension_numbers = #tpu.dot_dimension_numbers<[1], [1], [0], [0], [0, 0, 1, 0], [], []>} : vector<2x32xf32>, vector<2x32xf32>, vector<2x2xf32> -> vector<2x2xf32>
    %cst_35 = arith.constant 2.82842708 : f32
    %28 = vector.broadcast %cst_35 : f32 to vector<2x2xf32>
    %29 = arith.divf %27, %28 : vector<2x2xf32>
    %30 = math.floor %29 : vector<2x2xf32>
    %cst_36 = arith.constant dense<0xFF800000> : vector<2xf32>
    %31 = vector.multi_reduction <maximumf>, %30, %cst_36 [1] : vector<2x2xf32> to vector<2xf32>
    %32 = vector.shape_cast %31 : vector<2xf32> to vector<2x1xf32>
    %33 = vector.broadcast %32 : vector<2x1xf32> to vector<2x2xf32>
    %34 = arith.subf %30, %33 : vector<2x2xf32>
    %35 = math.exp %34 : vector<2x2xf32>
    %cst_37 = arith.constant dense<0.000000e+00> : vector<2xf32>
    %36 = vector.multi_reduction <add>, %35, %cst_37 [1] : vector<2x2xf32> to vector<2xf32>
    %37 = vector.shape_cast %36 : vector<2xf32> to vector<2x1xf32>
    %cst_38 = arith.constant 1.000000e+00 : f32
    %38 = vector.broadcast %cst_38 : f32 to vector<2x1xf32>
    %39 = arith.divf %38, %37 : vector<2x1xf32>
    %40 = vector.broadcast %39 : vector<2x1xf32> to vector<2x2xf32>
    %41 = arith.mulf %35, %40 : vector<2x2xf32>
    %c0_39 = arith.constant 0 : index
    %c0_40 = arith.constant 0 : index
    %c0_41 = arith.constant 0 : index
    %c0_42 = arith.constant 0 : index
    %42 = vector.load %arg13[%c0_39, %c0_40, %c0_41, %c0_42] : memref<1x4x2x2xf32, #tpu.memory_space<vmem>>, vector<1x1x2x2xf32>
    %43 = vector.shape_cast %42 : vector<1x1x2x2xf32> to vector<2x2xf32>
    %44 = vector.shape_cast %41 : vector<2x2xf32> to vector<1x1x2x2xf32>
    tpu.vector_store %arg13[%c0_39, %c0_40, %c0_41, %c0_42], %44 {strides = array<i32>} : memref<1x4x2x2xf32, #tpu.memory_space<vmem>>, vector<1x1x2x2xf32>,
    %45 = arith.truncf %41 : vector<2x2xf32> to vector<2x2xbf16>
    %46 = arith.truncf %26 : vector<2x32xf32> to vector<2x32xbf16>
    %cst_43 = arith.constant dense<0.000000e+00> : vector<2x32xf32>
    %47 = tpu.matmul %45, %46, %cst_43 {dimension_numbers = #tpu.dot_dimension_numbers<[1], [0], [0], [1], [0, 0, 1, 1], [], []>} : vector<2x2xbf16>, vector<2x32xbf16>, vector<2x32xf32> -> vector<2x32xf32>
    %c0_44 = arith.constant 0 : index
    %c0_45 = arith.constant 0 : index
    %48 = tpu.strided_load %arg14[%c0_44, %c0_45] {strides = array<i32: 4, 1>} : memref<8x32xf32, #tpu.memory_space<vmem>>, vector<2x32xf32>
    tpu.strided_store %arg14[%c0_44, %c0_45], %47 {strides = array<i32: 4, 1>} : memref<8x32xf32, #tpu.memory_space<vmem>>, vector<2x32xf32>
    %c1 = arith.constant 1 : index
    %c0_46 = arith.constant 0 : index
    %49 = tpu.strided_load %arg14[%c1, %c0_46] {strides = array<i32: 4, 1>} : memref<8x32xf32, #tpu.memory_space<vmem>>, vector<2x32xf32>
    %c1_47 = arith.constant 1 : index
    %c0_48 = arith.constant 0 : index
    %50 = tpu.strided_load %arg15[%c1_47, %c0_48] {strides = array<i32: 4, 1>} : memref<8x32xf32, #tpu.memory_space<vmem>>, vector<2x32xf32>
    %c1_49 = arith.constant 1 : index
    %c0_50 = arith.constant 0 : index
    %51 = tpu.strided_load %arg16[%c1_49, %c0_50] {strides = array<i32: 4, 1>} : memref<8x32xf32, #tpu.memory_space<vmem>>, vector<2x32xf32>
    %cst_51 = arith.constant dense<0.000000e+00> : vector<2x2xf32>
    %52 = tpu.matmul %49, %50, %cst_51 {dimension_numbers = #tpu.dot_dimension_numbers<[1], [1], [0], [0], [0, 0, 1, 0], [], []>} : vector<2x32xf32>, vector<2x32xf32>, vector<2x2xf32> -> vector<2x2xf32>
    %cst_52 = arith.constant 2.82842708 : f32
    %53 = vector.broadcast %cst_52 : f32 to vector<2x2xf32>
    %54 = arith.divf %52, %53 : vector<2x2xf32>
    %55 = math.floor %54 : vector<2x2xf32>
    %cst_53 = arith.constant dense<0xFF800000> : vector<2xf32>
    %56 = vector.multi_reduction <maximumf>, %55, %cst_53 [1] : vector<2x2xf32> to vector<2xf32>
    %57 = vector.shape_cast %56 : vector<2xf32> to vector<2x1xf32>
    %58 = vector.broadcast %57 : vector<2x1xf32> to vector<2x2xf32>
    %59 = arith.subf %55, %58 : vector<2x2xf32>
    %60 = math.exp %59 : vector<2x2xf32>
    %cst_54 = arith.constant dense<0.000000e+00> : vector<2xf32>
    %61 = vector.multi_reduction <add>, %60, %cst_54 [1] : vector<2x2xf32> to vector<2xf32>
    %62 = vector.shape_cast %61 : vector<2xf32> to vector<2x1xf32>
    %cst_55 = arith.constant 1.000000e+00 : f32
    %63 = vector.broadcast %cst_55 : f32 to vector<2x1xf32>
    %64 = arith.divf %63, %62 : vector<2x1xf32>
    %65 = vector.broadcast %64 : vector<2x1xf32> to vector<2x2xf32>
    %66 = arith.mulf %60, %65 : vector<2x2xf32>
    %c0_56 = arith.constant 0 : index
    %c1_57 = arith.constant 1 : index
    %c0_58 = arith.constant 0 : index
    %c0_59 = arith.constant 0 : index
    %67 = vector.load %arg13[%c0_56, %c1_57, %c0_58, %c0_59] : memref<1x4x2x2xf32, #tpu.memory_space<vmem>>, vector<1x1x2x2xf32>
    %68 = vector.shape_cast %67 : vector<1x1x2x2xf32> to vector<2x2xf32>
    %69 = vector.shape_cast %66 : vector<2x2xf32> to vector<1x1x2x2xf32>
    tpu.vector_store %arg13[%c0_56, %c1_57, %c0_58, %c0_59], %69 {strides = array<i32>} : memref<1x4x2x2xf32, #tpu.memory_space<vmem>>, vector<1x1x2x2xf32>,
    %70 = arith.truncf %66 : vector<2x2xf32> to vector<2x2xbf16>
    %71 = arith.truncf %51 : vector<2x32xf32> to vector<2x32xbf16>
    %cst_60 = arith.constant dense<0.000000e+00> : vector<2x32xf32>
    %72 = tpu.matmul %70, %71, %cst_60 {dimension_numbers = #tpu.dot_dimension_numbers<[1], [0], [0], [1], [0, 0, 1, 1], [], []>} : vector<2x2xbf16>, vector<2x32xbf16>, vector<2x32xf32> -> vector<2x32xf32>
    %c1_61 = arith.constant 1 : index
    %c0_62 = arith.constant 0 : index
    %73 = tpu.strided_load %arg14[%c1_61, %c0_62] {strides = array<i32: 4, 1>} : memref<8x32xf32, #tpu.memory_space<vmem>>, vector<2x32xf32>
    tpu.strided_store %arg14[%c1_61, %c0_62], %72 {strides = array<i32: 4, 1>} : memref<8x32xf32, #tpu.memory_space<vmem>>, vector<2x32xf32>
    %c2 = arith.constant 2 : index
    %c0_63 = arith.constant 0 : index
    %74 = tpu.strided_load %arg14[%c2, %c0_63] {strides = array<i32: 4, 1>} : memref<8x32xf32, #tpu.memory_space<vmem>>, vector<2x32xf32>
    %c2_64 = arith.constant 2 : index
    %c0_65 = arith.constant 0 : index
    %75 = tpu.strided_load %arg15[%c2_64, %c0_65] {strides = array<i32: 4, 1>} : memref<8x32xf32, #tpu.memory_space<vmem>>, vector<2x32xf32>
    %c2_66 = arith.constant 2 : index
    %c0_67 = arith.constant 0 : index
    %76 = tpu.strided_load %arg16[%c2_66, %c0_67] {strides = array<i32: 4, 1>} : memref<8x32xf32, #tpu.memory_space<vmem>>, vector<2x32xf32>
    %cst_68 = arith.constant dense<0.000000e+00> : vector<2x2xf32>
    %77 = tpu.matmul %74, %75, %cst_68 {dimension_numbers = #tpu.dot_dimension_numbers<[1], [1], [0], [0], [0, 0, 1, 0], [], []>} : vector<2x32xf32>, vector<2x32xf32>, vector<2x2xf32> -> vector<2x2xf32>
    %cst_69 = arith.constant 2.82842708 : f32
    %78 = vector.broadcast %cst_69 : f32 to vector<2x2xf32>
    %79 = arith.divf %77, %78 : vector<2x2xf32>
    %80 = math.floor %79 : vector<2x2xf32>
    %cst_70 = arith.constant dense<0xFF800000> : vector<2xf32>
    %81 = vector.multi_reduction <maximumf>, %80, %cst_70 [1] : vector<2x2xf32> to vector<2xf32>
    %82 = vector.shape_cast %81 : vector<2xf32> to vector<2x1xf32>
    %83 = vector.broadcast %82 : vector<2x1xf32> to vector<2x2xf32>
    %84 = arith.subf %80, %83 : vector<2x2xf32>
    %85 = math.exp %84 : vector<2x2xf32>
    %cst_71 = arith.constant dense<0.000000e+00> : vector<2xf32>
    %86 = vector.multi_reduction <add>, %85, %cst_71 [1] : vector<2x2xf32> to vector<2xf32>
    %87 = vector.shape_cast %86 : vector<2xf32> to vector<2x1xf32>
    %cst_72 = arith.constant 1.000000e+00 : f32
    %88 = vector.broadcast %cst_72 : f32 to vector<2x1xf32>
    %89 = arith.divf %88, %87 : vector<2x1xf32>
    %90 = vector.broadcast %89 : vector<2x1xf32> to vector<2x2xf32>
    %91 = arith.mulf %85, %90 : vector<2x2xf32>
    %c0_73 = arith.constant 0 : index
    %c2_74 = arith.constant 2 : index
    %c0_75 = arith.constant 0 : index
    %c0_76 = arith.constant 0 : index
    %92 = vector.load %arg13[%c0_73, %c2_74, %c0_75, %c0_76] : memref<1x4x2x2xf32, #tpu.memory_space<vmem>>, vector<1x1x2x2xf32>
    %93 = vector.shape_cast %92 : vector<1x1x2x2xf32> to vector<2x2xf32>
    %94 = vector.shape_cast %91 : vector<2x2xf32> to vector<1x1x2x2xf32>
    tpu.vector_store %arg13[%c0_73, %c2_74, %c0_75, %c0_76], %94 {strides = array<i32>} : memref<1x4x2x2xf32, #tpu.memory_space<vmem>>, vector<1x1x2x2xf32>,
    %95 = arith.truncf %91 : vector<2x2xf32> to vector<2x2xbf16>
    %96 = arith.truncf %76 : vector<2x32xf32> to vector<2x32xbf16>
    %cst_77 = arith.constant dense<0.000000e+00> : vector<2x32xf32>
    %97 = tpu.matmul %95, %96, %cst_77 {dimension_numbers = #tpu.dot_dimension_numbers<[1], [0], [0], [1], [0, 0, 1, 1], [], []>} : vector<2x2xbf16>, vector<2x32xbf16>, vector<2x32xf32> -> vector<2x32xf32>
    %c2_78 = arith.constant 2 : index
    %c0_79 = arith.constant 0 : index
    %98 = tpu.strided_load %arg14[%c2_78, %c0_79] {strides = array<i32: 4, 1>} : memref<8x32xf32, #tpu.memory_space<vmem>>, vector<2x32xf32>
    tpu.strided_store %arg14[%c2_78, %c0_79], %97 {strides = array<i32: 4, 1>} : memref<8x32xf32, #tpu.memory_space<vmem>>, vector<2x32xf32>
    %c3 = arith.constant 3 : index
    %c0_80 = arith.constant 0 : index
    %99 = tpu.strided_load %arg14[%c3, %c0_80] {strides = array<i32: 4, 1>} : memref<8x32xf32, #tpu.memory_space<vmem>>, vector<2x32xf32>
    %c3_81 = arith.constant 3 : index
    %c0_82 = arith.constant 0 : index
    %100 = tpu.strided_load %arg15[%c3_81, %c0_82] {strides = array<i32: 4, 1>} : memref<8x32xf32, #tpu.memory_space<vmem>>, vector<2x32xf32>
    %c3_83 = arith.constant 3 : index
    %c0_84 = arith.constant 0 : index
    %101 = tpu.strided_load %arg16[%c3_83, %c0_84] {strides = array<i32: 4, 1>} : memref<8x32xf32, #tpu.memory_space<vmem>>, vector<2x32xf32>
    %cst_85 = arith.constant dense<0.000000e+00> : vector<2x2xf32>
    %102 = tpu.matmul %99, %100, %cst_85 {dimension_numbers = #tpu.dot_dimension_numbers<[1], [1], [0], [0], [0, 0, 1, 0], [], []>} : vector<2x32xf32>, vector<2x32xf32>, vector<2x2xf32> -> vector<2x2xf32>
    %cst_86 = arith.constant 2.82842708 : f32
    %103 = vector.broadcast %cst_86 : f32 to vector<2x2xf32>
    %104 = arith.divf %102, %103 : vector<2x2xf32>
    %105 = math.floor %104 : vector<2x2xf32>
    %cst_87 = arith.constant dense<0xFF800000> : vector<2xf32>
    %106 = vector.multi_reduction <maximumf>, %105, %cst_87 [1] : vector<2x2xf32> to vector<2xf32>
    %107 = vector.shape_cast %106 : vector<2xf32> to vector<2x1xf32>
    %108 = vector.broadcast %107 : vector<2x1xf32> to vector<2x2xf32>
    %109 = arith.subf %105, %108 : vector<2x2xf32>
    %110 = math.exp %109 : vector<2x2xf32>
    %cst_88 = arith.constant dense<0.000000e+00> : vector<2xf32>
    %111 = vector.multi_reduction <add>, %110, %cst_88 [1] : vector<2x2xf32> to vector<2xf32>
    %112 = vector.shape_cast %111 : vector<2xf32> to vector<2x1xf32>
    %cst_89 = arith.constant 1.000000e+00 : f32
    %113 = vector.broadcast %cst_89 : f32 to vector<2x1xf32>
    %114 = arith.divf %113, %112 : vector<2x1xf32>
    %115 = vector.broadcast %114 : vector<2x1xf32> to vector<2x2xf32>
    %116 = arith.mulf %110, %115 : vector<2x2xf32>
    %c0_90 = arith.constant 0 : index
    %c3_91 = arith.constant 3 : index
    %c0_92 = arith.constant 0 : index
    %c0_93 = arith.constant 0 : index
    %117 = vector.load %arg13[%c0_90, %c3_91, %c0_92, %c0_93] : memref<1x4x2x2xf32, #tpu.memory_space<vmem>>, vector<1x1x2x2xf32>
    %118 = vector.shape_cast %117 : vector<1x1x2x2xf32> to vector<2x2xf32>
    %119 = vector.shape_cast %116 : vector<2x2xf32> to vector<1x1x2x2xf32>
    tpu.vector_store %arg13[%c0_90, %c3_91, %c0_92, %c0_93], %119 {strides = array<i32>} : memref<1x4x2x2xf32, #tpu.memory_space<vmem>>, vector<1x1x2x2xf32>,
    %120 = arith.truncf %116 : vector<2x2xf32> to vector<2x2xbf16>
    %121 = arith.truncf %101 : vector<2x32xf32> to vector<2x32xbf16>
    %cst_94 = arith.constant dense<0.000000e+00> : vector<2x32xf32>
    %122 = tpu.matmul %120, %121, %cst_94 {dimension_numbers = #tpu.dot_dimension_numbers<[1], [0], [0], [1], [0, 0, 1, 1], [], []>} : vector<2x2xbf16>, vector<2x32xbf16>, vector<2x32xf32> -> vector<2x32xf32>
    %c3_95 = arith.constant 3 : index
    %c0_96 = arith.constant 0 : index
    %123 = tpu.strided_load %arg14[%c3_95, %c0_96] {strides = array<i32: 4, 1>} : memref<8x32xf32, #tpu.memory_space<vmem>>, vector<2x32xf32>
    tpu.strided_store %arg14[%c3_95, %c0_96], %122 {strides = array<i32: 4, 1>} : memref<8x32xf32, #tpu.memory_space<vmem>>, vector<2x32xf32>
    %c0_97 = arith.constant 0 : index
    %c0_98 = arith.constant 0 : index
    %124 = vector.load %arg14[%c0_97, %c0_98] : memref<8x32xf32, #tpu.memory_space<vmem>>, vector<8x32xf32>
    %125 = arith.truncf %124 : vector<8x32xf32> to vector<8x32xbf16>
    %c0_99 = arith.constant 0 : index
    %c0_100 = arith.constant 0 : index
    %126 = vector.load %arg10[%c0_99, %c0_100] : memref<32x32xf32, #tpu.memory_space<vmem>>, vector<32x32xf32>
    %127 = arith.truncf %126 : vector<32x32xf32> to vector<32x32xbf16>
    %cst_101 = arith.constant dense<0.000000e+00> : vector<8x32xf32>
    %128 = tpu.matmul %125, %127, %cst_101 {dimension_numbers = #tpu.dot_dimension_numbers<[1], [0], [0], [1], [0, 0, 1, 1], [], []>} : vector<8x32xbf16>, vector<32x32xbf16>, vector<8x32xf32> -> vector<8x32xf32>
    %c0_102 = arith.constant 0 : index
    %c0_103 = arith.constant 0 : index
    %129 = vector.load %arg11[%c0_102, %c0_103] : memref<1x32xf32, #tpu.memory_space<vmem>>, vector<1x32xf32>
    %130 = vector.broadcast %129 : vector<1x32xf32> to vector<8x32xf32>
    %131 = arith.addf %128, %130 : vector<8x32xf32>
    %c0_104 = arith.constant 0 : index
    %c0_105 = arith.constant 0 : index
    %c0_106 = arith.constant 0 : index
    %132 = vector.load %arg12[%c0_104, %c0_105, %c0_106] : memref<1x8x32xf32, #tpu.memory_space<vmem>>, vector<1x8x32xf32>
    %133 = vector.shape_cast %132 : vector<1x8x32xf32> to vector<8x32xf32>
    %134 = vector.shape_cast %131 : vector<8x32xf32> to vector<1x8x32xf32>
    tpu.vector_store %arg12[%c0_104, %c0_105, %c0_106], %134 {strides = array<i32>} : memref<1x8x32xf32, #tpu.memory_space<vmem>>, vector<1x8x32xf32>,
    return
  }
  func.func @transform_0(%arg0: i32) -> (i32, i32, i32) {
    %c0_i32 = arith.constant 0 : i32
    %c0_i32_0 = arith.constant 0 : i32
    %c0_i32_1 = arith.constant 0 : i32
    return %arg0, %c0_i32, %c0_i32_0 : i32, i32, i32
  }
  func.func @transform_1(%arg0: i32) -> (i32, i32, i32) {
    %c0_i32 = arith.constant 0 : i32
    %c0_i32_0 = arith.constant 0 : i32
    %c0_i32_1 = arith.constant 0 : i32
    return %arg0, %c0_i32, %c0_i32_0 : i32, i32, i32
  }
  func.func @transform_2(%arg0: i32) -> (i32, i32, i32) {
    %c0_i32 = arith.constant 0 : i32
    %c0_i32_0 = arith.constant 0 : i32
    %c0_i32_1 = arith.constant 0 : i32
    return %arg0, %c0_i32, %c0_i32_0 : i32, i32, i32
  }
  func.func @transform_3(%arg0: i32) -> (i32, i32) {
    %c0_i32 = arith.constant 0 : i32
    %c0_i32_0 = arith.constant 0 : i32
    %c0_i32_1 = arith.constant 0 : i32
    return %c0_i32, %c0_i32_0 : i32, i32
  }
  func.func @transform_4(%arg0: i32) -> (i32, i32) {
    %c0_i32 = arith.constant 0 : i32
    %c0_i32_0 = arith.constant 0 : i32
    %c0_i32_1 = arith.constant 0 : i32
    return %c0_i32, %c0_i32_0 : i32, i32
  }
  func.func @transform_5(%arg0: i32) -> (i32, i32) {
    %c0_i32 = arith.constant 0 : i32
    %c0_i32_0 = arith.constant 0 : i32
    %c0_i32_1 = arith.constant 0 : i32
    return %c0_i32, %c0_i32_0 : i32, i32
  }
  func.func @transform_6(%arg0: i32) -> (i32, i32) {
    %c0_i32 = arith.constant 0 : i32
    %c0_i32_0 = arith.constant 0 : i32
    %c0_i32_1 = arith.constant 0 : i32
    return %c0_i32, %c0_i32_0 : i32, i32
  }
  func.func @transform_7(%arg0: i32) -> (i32, i32) {
    %c0_i32 = arith.constant 0 : i32
    %c0_i32_0 = arith.constant 0 : i32
    %c0_i32_1 = arith.constant 0 : i32
    return %c0_i32, %c0_i32_0 : i32, i32
  }
  func.func @transform_8(%arg0: i32) -> (i32, i32) {
    %c0_i32 = arith.constant 0 : i32
    %c0_i32_0 = arith.constant 0 : i32
    %c0_i32_1 = arith.constant 0 : i32
    return %c0_i32, %c0_i32_0 : i32, i32
  }
  func.func @transform_9(%arg0: i32) -> (i32, i32) {
    %c0_i32 = arith.constant 0 : i32
    %c0_i32_0 = arith.constant 0 : i32
    %c0_i32_1 = arith.constant 0 : i32
    return %c0_i32, %c0_i32_0 : i32, i32
  }
  func.func @transform_10(%arg0: i32) -> (i32, i32) {
    %c0_i32 = arith.constant 0 : i32
    %c0_i32_0 = arith.constant 0 : i32
    %c0_i32_1 = arith.constant 0 : i32
    return %c0_i32, %c0_i32_0 : i32, i32
  }
  func.func @transform_11(%arg0: i32) -> (i32, i32, i32) {
    %c0_i32 = arith.constant 0 : i32
    %c0_i32_0 = arith.constant 0 : i32
    %c0_i32_1 = arith.constant 0 : i32
    return %arg0, %c0_i32, %c0_i32_0 : i32, i32, i32
  }
  func.func @transform_12(%arg0: i32) -> (i32, i32, i32, i32) {
    %c0_i32 = arith.constant 0 : i32
    %c0_i32_0 = arith.constant 0 : i32
    %c0_i32_1 = arith.constant 0 : i32
    %c0_i32_2 = arith.constant 0 : i32
    return %arg0, %c0_i32, %c0_i32_0, %c0_i32_1 : i32, i32, i32, i32
  }
}

module attributes {stable_mosaic.version = 11 : i64} {
  func.func @_fused_attention_kernel(%arg0: i32, %arg1: memref<1x8x32xf32, #tpu.memory_space<vmem>>, %arg2: memref<1x8x32xf32, #tpu.memory_space<vmem>>, %arg3: memref<1x8x32xf32, #tpu.memory_space<vmem>>, %arg4: memref<32x32xf32, #tpu.memory_space<vmem>>, %arg5: memref<1x32xf32, #tpu.memory_space<vmem>>, %arg6: memref<32x32xf32, #tpu.memory_space<vmem>>, %arg7: memref<1x32xf32, #tpu.memory_space<vmem>>, %arg8: memref<32x32xf32, #tpu.memory_space<vmem>>, %arg9: memref<1x32xf32, #tpu.memory_space<vmem>>, %arg10: memref<32x32xf32, #tpu.memory_space<vmem>>, %arg11: memref<1x32xf32, #tpu.memory_space<vmem>>, %arg12: memref<1x8x32xf32, #tpu.memory_space<vmem>>, %arg13: memref<1x4x2x2xf32, #tpu.memory_space<vmem>>, %arg14: memref<8x32xf32, #tpu.memory_space<vmem>>, %arg15: memref<8x32xf32, #tpu.memory_space<vmem>>, %arg16: memref<8x32xf32, #tpu.memory_space<vmem>>) attributes {dimension_semantics = [#tpu.dimension_semantics<parallel>], iteration_bounds = array<i64: 2>, scalar_prefetch = 0 : i64, scratch_operands = 3 : i64, tpu.core_type = #tpu.core_type<tc>, window_params = [{transform_indices = @transform_0, window_bounds = array<i64: 1, 8, 32>}, {transform_indices = @transform_1, window_bounds = array<i64: 1, 8, 32>}, {transform_indices = @transform_2, window_bounds = array<i64: 1, 8, 32>}, {pipeline_mode = #tpu.pipeline_mode<synchronous>, transform_indices = @transform_3, window_bounds = array<i64: 32, 32>}, {pipeline_mode = #tpu.pipeline_mode<synchronous>, transform_indices = @transform_4, window_bounds = array<i64: 1, 32>}, {pipeline_mode = #tpu.pipeline_mode<synchronous>, transform_indices = @transform_5, window_bounds = array<i64: 32, 32>}, {pipeline_mode = #tpu.pipeline_mode<synchronous>, transform_indices = @transform_6, window_bounds = array<i64: 1, 32>}, {pipeline_mode = #tpu.pipeline_mode<synchronous>, transform_indices = @transform_7, window_bounds = array<i64: 32, 32>}, {pipeline_mode = #tpu.pipeline_mode<synchronous>, transform_indices = @transform_8, window_bounds = array<i64: 1, 32>}, {pipeline_mode = #tpu.pipeline_mode<synchronous>, transform_indices = @transform_9, window_bounds = array<i64: 32, 32>}, {pipeline_mode = #tpu.pipeline_mode<synchronous>, transform_indices = @transform_10, window_bounds = array<i64: 1, 32>}, {transform_indices = @transform_11, window_bounds = array<i64: 1, 8, 32>}, {transform_indices = @transform_12, window_bounds = array<i64: 1, 4, 2, 2>}]} {
    %c0 = arith.constant 0 : index
    %c0_0 = arith.constant 0 : index
    %c0_1 = arith.constant 0 : index
    %0 = vector.load %arg1[%c0, %c0_0, %c0_1] : memref<1x8x32xf32, #tpu.memory_space<vmem>>, vector<1x8x32xf32>
    %1 = vector.shape_cast %0 : vector<1x8x32xf32> to vector<8x32xf32>
    %c0_2 = arith.constant 0 : index
    %c0_3 = arith.constant 0 : index
    %2 = vector.load %arg4[%c0_2, %c0_3] : memref<32x32xf32, #tpu.memory_space<vmem>>, vector<32x32xf32>
    %cst = arith.constant dense<0.000000e+00> : vector<8x32xf32>
    %3 = tpu.matmul %1, %2, %cst {dimension_numbers = #tpu.dot_dimension_numbers<[1], [0], [0], [1], [0, 0, 1, 1], [], []>} : vector<8x32xf32>, vector<32x32xf32>, vector<8x32xf32> -> vector<8x32xf32>
    %c0_4 = arith.constant 0 : index
    %c0_5 = arith.constant 0 : index
    %4 = vector.load %arg5[%c0_4, %c0_5] : memref<1x32xf32, #tpu.memory_space<vmem>>, vector<1x32xf32>
    %5 = vector.broadcast %4 : vector<1x32xf32> to vector<8x32xf32>
    %6 = arith.addf %3, %5 : vector<8x32xf32>
    %c0_6 = arith.constant 0 : index
    %c0_7 = arith.constant 0 : index
    %7 = vector.load %arg14[%c0_6, %c0_7] : memref<8x32xf32, #tpu.memory_space<vmem>>, vector<8x32xf32>
    tpu.vector_store %arg14[%c0_6, %c0_7], %6 {strides = array<i32>} : memref<8x32xf32, #tpu.memory_space<vmem>>, vector<8x32xf32>,
    %c0_8 = arith.constant 0 : index
    %c0_9 = arith.constant 0 : index
    %c0_10 = arith.constant 0 : index
    %8 = vector.load %arg2[%c0_8, %c0_9, %c0_10] : memref<1x8x32xf32, #tpu.memory_space<vmem>>, vector<1x8x32xf32>
    %9 = vector.shape_cast %8 : vector<1x8x32xf32> to vector<8x32xf32>
    %c0_11 = arith.constant 0 : index
    %c0_12 = arith.constant 0 : index
    %10 = vector.load %arg6[%c0_11, %c0_12] : memref<32x32xf32, #tpu.memory_space<vmem>>, vector<32x32xf32>
    %cst_13 = arith.constant dense<0.000000e+00> : vector<8x32xf32>
    %11 = tpu.matmul %9, %10, %cst_13 {dimension_numbers = #tpu.dot_dimension_numbers<[1], [0], [0], [1], [0, 0, 1, 1], [], []>} : vector<8x32xf32>, vector<32x32xf32>, vector<8x32xf32> -> vector<8x32xf32>
    %c0_14 = arith.constant 0 : index
    %c0_15 = arith.constant 0 : index
    %12 = vector.load %arg7[%c0_14, %c0_15] : memref<1x32xf32, #tpu.memory_space<vmem>>, vector<1x32xf32>
    %13 = vector.broadcast %12 : vector<1x32xf32> to vector<8x32xf32>
    %14 = arith.addf %11, %13 : vector<8x32xf32>
    %c0_16 = arith.constant 0 : index
    %c0_17 = arith.constant 0 : index
    %15 = vector.load %arg15[%c0_16, %c0_17] : memref<8x32xf32, #tpu.memory_space<vmem>>, vector<8x32xf32>
    tpu.vector_store %arg15[%c0_16, %c0_17], %14 {strides = array<i32>} : memref<8x32xf32, #tpu.memory_space<vmem>>, vector<8x32xf32>,
    %c0_18 = arith.constant 0 : index
    %c0_19 = arith.constant 0 : index
    %c0_20 = arith.constant 0 : index
    %16 = vector.load %arg3[%c0_18, %c0_19, %c0_20] : memref<1x8x32xf32, #tpu.memory_space<vmem>>, vector<1x8x32xf32>
    %17 = vector.shape_cast %16 : vector<1x8x32xf32> to vector<8x32xf32>
    %c0_21 = arith.constant 0 : index
    %c0_22 = arith.constant 0 : index
    %18 = vector.load %arg8[%c0_21, %c0_22] : memref<32x32xf32, #tpu.memory_space<vmem>>, vector<32x32xf32>
    %cst_23 = arith.constant dense<0.000000e+00> : vector<8x32xf32>
    %19 = tpu.matmul %17, %18, %cst_23 {dimension_numbers = #tpu.dot_dimension_numbers<[1], [0], [0], [1], [0, 0, 1, 1], [], []>} : vector<8x32xf32>, vector<32x32xf32>, vector<8x32xf32> -> vector<8x32xf32>
    %c0_24 = arith.constant 0 : index
    %c0_25 = arith.constant 0 : index
    %20 = vector.load %arg9[%c0_24, %c0_25] : memref<1x32xf32, #tpu.memory_space<vmem>>, vector<1x32xf32>
    %21 = vector.broadcast %20 : vector<1x32xf32> to vector<8x32xf32>
    %22 = arith.addf %19, %21 : vector<8x32xf32>
    %c0_26 = arith.constant 0 : index
    %c0_27 = arith.constant 0 : index
    %23 = vector.load %arg16[%c0_26, %c0_27] : memref<8x32xf32, #tpu.memory_space<vmem>>, vector<8x32xf32>
    tpu.vector_store %arg16[%c0_26, %c0_27], %22 {strides = array<i32>} : memref<8x32xf32, #tpu.memory_space<vmem>>, vector<8x32xf32>,
    %c0_28 = arith.constant 0 : index
    %c0_29 = arith.constant 0 : index
    %24 = tpu.strided_load %arg14[%c0_28, %c0_29] {strides = array<i32: 4, 1>} : memref<8x32xf32, #tpu.memory_space<vmem>>, vector<2x32xf32>
    %c0_30 = arith.constant 0 : index
    %c0_31 = arith.constant 0 : index
    %25 = tpu.strided_load %arg15[%c0_30, %c0_31] {strides = array<i32: 4, 1>} : memref<8x32xf32, #tpu.memory_space<vmem>>, vector<2x32xf32>
    %c0_32 = arith.constant 0 : index
    %c0_33 = arith.constant 0 : index
    %26 = tpu.strided_load %arg16[%c0_32, %c0_33] {strides = array<i32: 4, 1>} : memref<8x32xf32, #tpu.memory_space<vmem>>, vector<2x32xf32>
    %cst_34 = arith.constant dense<0.000000e+00> : vector<2x2xf32>
    %27 = tpu.matmul %24, %25, %cst_34 {dimension_numbers = #tpu.dot_dimension_numbers<[1], [1], [0], [0], [0, 0, 1, 0], [], []>} : vector<2x32xf32>, vector<2x32xf32>, vector<2x2xf32> -> vector<2x2xf32>
    %cst_35 = arith.constant 2.82842708 : f32
    %28 = vector.broadcast %cst_35 : f32 to vector<2x2xf32>
    %29 = arith.divf %27, %28 : vector<2x2xf32>
    %30 = math.floor %29 : vector<2x2xf32>
    %cst_36 = arith.constant dense<0xFF800000> : vector<2xf32>
    %31 = vector.multi_reduction <maximumf>, %30, %cst_36 [1] : vector<2x2xf32> to vector<2xf32>
    %32 = vector.shape_cast %31 : vector<2xf32> to vector<2x1xf32>
    %33 = vector.broadcast %32 : vector<2x1xf32> to vector<2x2xf32>
    %34 = arith.subf %30, %33 : vector<2x2xf32>
    %35 = math.exp %34 : vector<2x2xf32>
    %cst_37 = arith.constant dense<0.000000e+00> : vector<2xf32>
    %36 = vector.multi_reduction <add>, %35, %cst_37 [1] : vector<2x2xf32> to vector<2xf32>
    %37 = vector.shape_cast %36 : vector<2xf32> to vector<2x1xf32>
    %cst_38 = arith.constant 1.000000e+00 : f32
    %38 = vector.broadcast %cst_38 : f32 to vector<2x1xf32>
    %39 = arith.divf %38, %37 : vector<2x1xf32>
    %40 = vector.broadcast %39 : vector<2x1xf32> to vector<2x2xf32>
    %41 = arith.mulf %35, %40 : vector<2x2xf32>
    %c0_39 = arith.constant 0 : index
    %c0_40 = arith.constant 0 : index
    %c0_41 = arith.constant 0 : index
    %c0_42 = arith.constant 0 : index
    %42 = vector.load %arg13[%c0_39, %c0_40, %c0_41, %c0_42] : memref<1x4x2x2xf32, #tpu.memory_space<vmem>>, vector<1x1x2x2xf32>
    %43 = vector.shape_cast %42 : vector<1x1x2x2xf32> to vector<2x2xf32>
    %44 = vector.shape_cast %41 : vector<2x2xf32> to vector<1x1x2x2xf32>
    tpu.vector_store %arg13[%c0_39, %c0_40, %c0_41, %c0_42], %44 {strides = array<i32>} : memref<1x4x2x2xf32, #tpu.memory_space<vmem>>, vector<1x1x2x2xf32>,
    %45 = arith.truncf %41 : vector<2x2xf32> to vector<2x2xbf16>
    %46 = arith.truncf %26 : vector<2x32xf32> to vector<2x32xbf16>
    %cst_43 = arith.constant dense<0.000000e+00> : vector<2x32xf32>
    %47 = tpu.matmul %45, %46, %cst_43 {dimension_numbers = #tpu.dot_dimension_numbers<[1], [0], [0], [1], [0, 0, 1, 1], [], []>} : vector<2x2xbf16>, vector<2x32xbf16>, vector<2x32xf32> -> vector<2x32xf32>
    %c0_44 = arith.constant 0 : index
    %c0_45 = arith.constant 0 : index
    %48 = tpu.strided_load %arg14[%c0_44, %c0_45] {strides = array<i32: 4, 1>} : memref<8x32xf32, #tpu.memory_space<vmem>>, vector<2x32xf32>
    tpu.strided_store %arg14[%c0_44, %c0_45], %47 {strides = array<i32: 4, 1>} : memref<8x32xf32, #tpu.memory_space<vmem>>, vector<2x32xf32>
    %c1 = arith.constant 1 : index
    %c0_46 = arith.constant 0 : index
    %49 = tpu.strided_load %arg14[%c1, %c0_46] {strides = array<i32: 4, 1>} : memref<8x32xf32, #tpu.memory_space<vmem>>, vector<2x32xf32>
    %c1_47 = arith.constant 1 : index
    %c0_48 = arith.constant 0 : index
    %50 = tpu.strided_load %arg15[%c1_47, %c0_48] {strides = array<i32: 4, 1>} : memref<8x32xf32, #tpu.memory_space<vmem>>, vector<2x32xf32>
    %c1_49 = arith.constant 1 : index
    %c0_50 = arith.constant 0 : index
    %51 = tpu.strided_load %arg16[%c1_49, %c0_50] {strides = array<i32: 4, 1>} : memref<8x32xf32, #tpu.memory_space<vmem>>, vector<2x32xf32>
    %cst_51 = arith.constant dense<0.000000e+00> : vector<2x2xf32>
    %52 = tpu.matmul %49, %50, %cst_51 {dimension_numbers = #tpu.dot_dimension_numbers<[1], [1], [0], [0], [0, 0, 1, 0], [], []>} : vector<2x32xf32>, vector<2x32xf32>, vector<2x2xf32> -> vector<2x2xf32>
    %cst_52 = arith.constant 2.82842708 : f32
    %53 = vector.broadcast %cst_52 : f32 to vector<2x2xf32>
    %54 = arith.divf %52, %53 : vector<2x2xf32>
    %55 = math.floor %54 : vector<2x2xf32>
    %cst_53 = arith.constant dense<0xFF800000> : vector<2xf32>
    %56 = vector.multi_reduction <maximumf>, %55, %cst_53 [1] : vector<2x2xf32> to vector<2xf32>
    %57 = vector.shape_cast %56 : vector<2xf32> to vector<2x1xf32>
    %58 = vector.broadcast %57 : vector<2x1xf32> to vector<2x2xf32>
    %59 = arith.subf %55, %58 : vector<2x2xf32>
    %60 = math.exp %59 : vector<2x2xf32>
    %cst_54 = arith.constant dense<0.000000e+00> : vector<2xf32>
    %61 = vector.multi_reduction <add>, %60, %cst_54 [1] : vector<2x2xf32> to vector<2xf32>
    %62 = vector.shape_cast %61 : vector<2xf32> to vector<2x1xf32>
    %cst_55 = arith.constant 1.000000e+00 : f32
    %63 = vector.broadcast %cst_55 : f32 to vector<2x1xf32>
    %64 = arith.divf %63, %62 : vector<2x1xf32>
    %65 = vector.broadcast %64 : vector<2x1xf32> to vector<2x2xf32>
    %66 = arith.mulf %60, %65 : vector<2x2xf32>
    %c0_56 = arith.constant 0 : index
    %c1_57 = arith.constant 1 : index
    %c0_58 = arith.constant 0 : index
    %c0_59 = arith.constant 0 : index
    %67 = vector.load %arg13[%c0_56, %c1_57, %c0_58, %c0_59] : memref<1x4x2x2xf32, #tpu.memory_space<vmem>>, vector<1x1x2x2xf32>
    %68 = vector.shape_cast %67 : vector<1x1x2x2xf32> to vector<2x2xf32>
    %69 = vector.shape_cast %66 : vector<2x2xf32> to vector<1x1x2x2xf32>
    tpu.vector_store %arg13[%c0_56, %c1_57, %c0_58, %c0_59], %69 {strides = array<i32>} : memref<1x4x2x2xf32, #tpu.memory_space<vmem>>, vector<1x1x2x2xf32>,
    %70 = arith.truncf %66 : vector<2x2xf32> to vector<2x2xbf16>
    %71 = arith.truncf %51 : vector<2x32xf32> to vector<2x32xbf16>
    %cst_60 = arith.constant dense<0.000000e+00> : vector<2x32xf32>
    %72 = tpu.matmul %70, %71, %cst_60 {dimension_numbers = #tpu.dot_dimension_numbers<[1], [0], [0], [1], [0, 0, 1, 1], [], []>} : vector<2x2xbf16>, vector<2x32xbf16>, vector<2x32xf32> -> vector<2x32xf32>
    %c1_61 = arith.constant 1 : index
    %c0_62 = arith.constant 0 : index
    %73 = tpu.strided_load %arg14[%c1_61, %c0_62] {strides = array<i32: 4, 1>} : memref<8x32xf32, #tpu.memory_space<vmem>>, vector<2x32xf32>
    tpu.strided_store %arg14[%c1_61, %c0_62], %72 {strides = array<i32: 4, 1>} : memref<8x32xf32, #tpu.memory_space<vmem>>, vector<2x32xf32>
    %c2 = arith.constant 2 : index
    %c0_63 = arith.constant 0 : index
    %74 = tpu.strided_load %arg14[%c2, %c0_63] {strides = array<i32: 4, 1>} : memref<8x32xf32, #tpu.memory_space<vmem>>, vector<2x32xf32>
    %c2_64 = arith.constant 2 : index
    %c0_65 = arith.constant 0 : index
    %75 = tpu.strided_load %arg15[%c2_64, %c0_65] {strides = array<i32: 4, 1>} : memref<8x32xf32, #tpu.memory_space<vmem>>, vector<2x32xf32>
    %c2_66 = arith.constant 2 : index
    %c0_67 = arith.constant 0 : index
    %76 = tpu.strided_load %arg16[%c2_66, %c0_67] {strides = array<i32: 4, 1>} : memref<8x32xf32, #tpu.memory_space<vmem>>, vector<2x32xf32>
    %cst_68 = arith.constant dense<0.000000e+00> : vector<2x2xf32>
    %77 = tpu.matmul %74, %75, %cst_68 {dimension_numbers = #tpu.dot_dimension_numbers<[1], [1], [0], [0], [0, 0, 1, 0], [], []>} : vector<2x32xf32>, vector<2x32xf32>, vector<2x2xf32> -> vector<2x2xf32>
    %cst_69 = arith.constant 2.82842708 : f32
    %78 = vector.broadcast %cst_69 : f32 to vector<2x2xf32>
    %79 = arith.divf %77, %78 : vector<2x2xf32>
    %80 = math.floor %79 : vector<2x2xf32>
    %cst_70 = arith.constant dense<0xFF800000> : vector<2xf32>
    %81 = vector.multi_reduction <maximumf>, %80, %cst_70 [1] : vector<2x2xf32> to vector<2xf32>
    %82 = vector.shape_cast %81 : vector<2xf32> to vector<2x1xf32>
    %83 = vector.broadcast %82 : vector<2x1xf32> to vector<2x2xf32>
    %84 = arith.subf %80, %83 : vector<2x2xf32>
    %85 = math.exp %84 : vector<2x2xf32>
    %cst_71 = arith.constant dense<0.000000e+00> : vector<2xf32>
    %86 = vector.multi_reduction <add>, %85, %cst_71 [1] : vector<2x2xf32> to vector<2xf32>
    %87 = vector.shape_cast %86 : vector<2xf32> to vector<2x1xf32>
    %cst_72 = arith.constant 1.000000e+00 : f32
    %88 = vector.broadcast %cst_72 : f32 to vector<2x1xf32>
    %89 = arith.divf %88, %87 : vector<2x1xf32>
    %90 = vector.broadcast %89 : vector<2x1xf32> to vector<2x2xf32>
    %91 = arith.mulf %85, %90 : vector<2x2xf32>
    %c0_73 = arith.constant 0 : index
    %c2_74 = arith.constant 2 : index
    %c0_75 = arith.constant 0 : index
    %c0_76 = arith.constant 0 : index
    %92 = vector.load %arg13[%c0_73, %c2_74, %c0_75, %c0_76] : memref<1x4x2x2xf32, #tpu.memory_space<vmem>>, vector<1x1x2x2xf32>
    %93 = vector.shape_cast %92 : vector<1x1x2x2xf32> to vector<2x2xf32>
    %94 = vector.shape_cast %91 : vector<2x2xf32> to vector<1x1x2x2xf32>
    tpu.vector_store %arg13[%c0_73, %c2_74, %c0_75, %c0_76], %94 {strides = array<i32>} : memref<1x4x2x2xf32, #tpu.memory_space<vmem>>, vector<1x1x2x2xf32>,
    %95 = arith.truncf %91 : vector<2x2xf32> to vector<2x2xbf16>
    %96 = arith.truncf %76 : vector<2x32xf32> to vector<2x32xbf16>
    %cst_77 = arith.constant dense<0.000000e+00> : vector<2x32xf32>
    %97 = tpu.matmul %95, %96, %cst_77 {dimension_numbers = #tpu.dot_dimension_numbers<[1], [0], [0], [1], [0, 0, 1, 1], [], []>} : vector<2x2xbf16>, vector<2x32xbf16>, vector<2x32xf32> -> vector<2x32xf32>
    %c2_78 = arith.constant 2 : index
    %c0_79 = arith.constant 0 : index
    %98 = tpu.strided_load %arg14[%c2_78, %c0_79] {strides = array<i32: 4, 1>} : memref<8x32xf32, #tpu.memory_space<vmem>>, vector<2x32xf32>
    tpu.strided_store %arg14[%c2_78, %c0_79], %97 {strides = array<i32: 4, 1>} : memref<8x32xf32, #tpu.memory_space<vmem>>, vector<2x32xf32>
    %c3 = arith.constant 3 : index
    %c0_80 = arith.constant 0 : index
    %99 = tpu.strided_load %arg14[%c3, %c0_80] {strides = array<i32: 4, 1>} : memref<8x32xf32, #tpu.memory_space<vmem>>, vector<2x32xf32>
    %c3_81 = arith.constant 3 : index
    %c0_82 = arith.constant 0 : index
    %100 = tpu.strided_load %arg15[%c3_81, %c0_82] {strides = array<i32: 4, 1>} : memref<8x32xf32, #tpu.memory_space<vmem>>, vector<2x32xf32>
    %c3_83 = arith.constant 3 : index
    %c0_84 = arith.constant 0 : index
    %101 = tpu.strided_load %arg16[%c3_83, %c0_84] {strides = array<i32: 4, 1>} : memref<8x32xf32, #tpu.memory_space<vmem>>, vector<2x32xf32>
    %cst_85 = arith.constant dense<0.000000e+00> : vector<2x2xf32>
    %102 = tpu.matmul %99, %100, %cst_85 {dimension_numbers = #tpu.dot_dimension_numbers<[1], [1], [0], [0], [0, 0, 1, 0], [], []>} : vector<2x32xf32>, vector<2x32xf32>, vector<2x2xf32> -> vector<2x2xf32>
    %cst_86 = arith.constant 2.82842708 : f32
    %103 = vector.broadcast %cst_86 : f32 to vector<2x2xf32>
    %104 = arith.divf %102, %103 : vector<2x2xf32>
    %105 = math.floor %104 : vector<2x2xf32>
    %cst_87 = arith.constant dense<0xFF800000> : vector<2xf32>
    %106 = vector.multi_reduction <maximumf>, %105, %cst_87 [1] : vector<2x2xf32> to vector<2xf32>
    %107 = vector.shape_cast %106 : vector<2xf32> to vector<2x1xf32>
    %108 = vector.broadcast %107 : vector<2x1xf32> to vector<2x2xf32>
    %109 = arith.subf %105, %108 : vector<2x2xf32>
    %110 = math.exp %109 : vector<2x2xf32>
    %cst_88 = arith.constant dense<0.000000e+00> : vector<2xf32>
    %111 = vector.multi_reduction <add>, %110, %cst_88 [1] : vector<2x2xf32> to vector<2xf32>
    %112 = vector.shape_cast %111 : vector<2xf32> to vector<2x1xf32>
    %cst_89 = arith.constant 1.000000e+00 : f32
    %113 = vector.broadcast %cst_89 : f32 to vector<2x1xf32>
    %114 = arith.divf %113, %112 : vector<2x1xf32>
    %115 = vector.broadcast %114 : vector<2x1xf32> to vector<2x2xf32>
    %116 = arith.mulf %110, %115 : vector<2x2xf32>
    %c0_90 = arith.constant 0 : index
    %c3_91 = arith.constant 3 : index
    %c0_92 = arith.constant 0 : index
    %c0_93 = arith.constant 0 : index
    %117 = vector.load %arg13[%c0_90, %c3_91, %c0_92, %c0_93] : memref<1x4x2x2xf32, #tpu.memory_space<vmem>>, vector<1x1x2x2xf32>
    %118 = vector.shape_cast %117 : vector<1x1x2x2xf32> to vector<2x2xf32>
    %119 = vector.shape_cast %116 : vector<2x2xf32> to vector<1x1x2x2xf32>
    tpu.vector_store %arg13[%c0_90, %c3_91, %c0_92, %c0_93], %119 {strides = array<i32>} : memref<1x4x2x2xf32, #tpu.memory_space<vmem>>, vector<1x1x2x2xf32>,
    %120 = arith.truncf %116 : vector<2x2xf32> to vector<2x2xbf16>
    %121 = arith.truncf %101 : vector<2x32xf32> to vector<2x32xbf16>
    %cst_94 = arith.constant dense<0.000000e+00> : vector<2x32xf32>
    %122 = tpu.matmul %120, %121, %cst_94 {dimension_numbers = #tpu.dot_dimension_numbers<[1], [0], [0], [1], [0, 0, 1, 1], [], []>} : vector<2x2xbf16>, vector<2x32xbf16>, vector<2x32xf32> -> vector<2x32xf32>
    %c3_95 = arith.constant 3 : index
    %c0_96 = arith.constant 0 : index
    %123 = tpu.strided_load %arg14[%c3_95, %c0_96] {strides = array<i32: 4, 1>} : memref<8x32xf32, #tpu.memory_space<vmem>>, vector<2x32xf32>
    tpu.strided_store %arg14[%c3_95, %c0_96], %122 {strides = array<i32: 4, 1>} : memref<8x32xf32, #tpu.memory_space<vmem>>, vector<2x32xf32>
    %c0_97 = arith.constant 0 : index
    %c0_98 = arith.constant 0 : index
    %124 = vector.load %arg14[%c0_97, %c0_98] : memref<8x32xf32, #tpu.memory_space<vmem>>, vector<8x32xf32>
    %125 = arith.truncf %124 : vector<8x32xf32> to vector<8x32xbf16>
    %c0_99 = arith.constant 0 : index
    %c0_100 = arith.constant 0 : index
    %126 = vector.load %arg10[%c0_99, %c0_100] : memref<32x32xf32, #tpu.memory_space<vmem>>, vector<32x32xf32>
    %127 = arith.truncf %126 : vector<32x32xf32> to vector<32x32xbf16>
    %cst_101 = arith.constant dense<0.000000e+00> : vector<8x32xf32>
    %128 = tpu.matmul %125, %127, %cst_101 {dimension_numbers = #tpu.dot_dimension_numbers<[1], [0], [0], [1], [0, 0, 1, 1], [], []>} : vector<8x32xbf16>, vector<32x32xbf16>, vector<8x32xf32> -> vector<8x32xf32>
    %c0_102 = arith.constant 0 : index
    %c0_103 = arith.constant 0 : index
    %129 = vector.load %arg11[%c0_102, %c0_103] : memref<1x32xf32, #tpu.memory_space<vmem>>, vector<1x32xf32>
    %130 = vector.broadcast %129 : vector<1x32xf32> to vector<8x32xf32>
    %131 = arith.addf %128, %130 : vector<8x32xf32>
    %c0_104 = arith.constant 0 : index
    %c0_105 = arith.constant 0 : index
    %c0_106 = arith.constant 0 : index
    %132 = vector.load %arg12[%c0_104, %c0_105, %c0_106] : memref<1x8x32xf32, #tpu.memory_space<vmem>>, vector<1x8x32xf32>
    %133 = vector.shape_cast %132 : vector<1x8x32xf32> to vector<8x32xf32>
    %134 = vector.shape_cast %131 : vector<8x32xf32> to vector<1x8x32xf32>
    tpu.vector_store %arg12[%c0_104, %c0_105, %c0_106], %134 {strides = array<i32>} : memref<1x8x32xf32, #tpu.memory_space<vmem>>, vector<1x8x32xf32>,
    return
  }
  func.func @transform_0(%arg0: i32) -> (i32, i32, i32) {
    %c0_i32 = arith.constant 0 : i32
    %c0_i32_0 = arith.constant 0 : i32
    %c0_i32_1 = arith.constant 0 : i32
    return %arg0, %c0_i32, %c0_i32_0 : i32, i32, i32
  }
  func.func @transform_1(%arg0: i32) -> (i32, i32, i32) {
    %c0_i32 = arith.constant 0 : i32
    %c0_i32_0 = arith.constant 0 : i32
    %c0_i32_1 = arith.constant 0 : i32
    return %arg0, %c0_i32, %c0_i32_0 : i32, i32, i32
  }
  func.func @transform_2(%arg0: i32) -> (i32, i32, i32) {
    %c0_i32 = arith.constant 0 : i32
    %c0_i32_0 = arith.constant 0 : i32
    %c0_i32_1 = arith.constant 0 : i32
    return %arg0, %c0_i32, %c0_i32_0 : i32, i32, i32
  }
  func.func @transform_3(%arg0: i32) -> (i32, i32) {
    %c0_i32 = arith.constant 0 : i32
    %c0_i32_0 = arith.constant 0 : i32
    %c0_i32_1 = arith.constant 0 : i32
    return %c0_i32, %c0_i32_0 : i32, i32
  }
  func.func @transform_4(%arg0: i32) -> (i32, i32) {
    %c0_i32 = arith.constant 0 : i32
    %c0_i32_0 = arith.constant 0 : i32
    %c0_i32_1 = arith.constant 0 : i32
    return %c0_i32, %c0_i32_0 : i32, i32
  }
  func.func @transform_5(%arg0: i32) -> (i32, i32) {
    %c0_i32 = arith.constant 0 : i32
    %c0_i32_0 = arith.constant 0 : i32
    %c0_i32_1 = arith.constant 0 : i32
    return %c0_i32, %c0_i32_0 : i32, i32
  }
  func.func @transform_6(%arg0: i32) -> (i32, i32) {
    %c0_i32 = arith.constant 0 : i32
    %c0_i32_0 = arith.constant 0 : i32
    %c0_i32_1 = arith.constant 0 : i32
    return %c0_i32, %c0_i32_0 : i32, i32
  }
  func.func @transform_7(%arg0: i32) -> (i32, i32) {
    %c0_i32 = arith.constant 0 : i32
    %c0_i32_0 = arith.constant 0 : i32
    %c0_i32_1 = arith.constant 0 : i32
    return %c0_i32, %c0_i32_0 : i32, i32
  }
  func.func @transform_8(%arg0: i32) -> (i32, i32) {
    %c0_i32 = arith.constant 0 : i32
    %c0_i32_0 = arith.constant 0 : i32
    %c0_i32_1 = arith.constant 0 : i32
    return %c0_i32, %c0_i32_0 : i32, i32
  }
  func.func @transform_9(%arg0: i32) -> (i32, i32) {
    %c0_i32 = arith.constant 0 : i32
    %c0_i32_0 = arith.constant 0 : i32
    %c0_i32_1 = arith.constant 0 : i32
    return %c0_i32, %c0_i32_0 : i32, i32
  }
  func.func @transform_10(%arg0: i32) -> (i32, i32) {
    %c0_i32 = arith.constant 0 : i32
    %c0_i32_0 = arith.constant 0 : i32
    %c0_i32_1 = arith.constant 0 : i32
    return %c0_i32, %c0_i32_0 : i32, i32
  }
  func.func @transform_11(%arg0: i32) -> (i32, i32, i32) {
    %c0_i32 = arith.constant 0 : i32
    %c0_i32_0 = arith.constant 0 : i32
    %c0_i32_1 = arith.constant 0 : i32
    return %arg0, %c0_i32, %c0_i32_0 : i32, i32, i32
  }
  func.func @transform_12(%arg0: i32) -> (i32, i32, i32, i32) {
    %c0_i32 = arith.constant 0 : i32
    %c0_i32_0 = arith.constant 0 : i32
    %c0_i32_1 = arith.constant 0 : i32
    %c0_i32_2 = arith.constant 0 : i32
    return %arg0, %c0_i32, %c0_i32_0, %c0_i32_1 : i32, i32, i32, i32
  }
}

</mosaic_0001>

<bundles_post_ra>
// kernel: tpu_custom_call.1
= control target key start
LH: loop header
LB: loop body
LE: loop exit
PB: predicated region body
PF: predicated region fallthrough
CT: control target
= control target key end

     0   :  { %s2804_s0 = inlined_call_operand.hbm [shape: f32[2,8,32], index: 0, kind: input, shape index: {}]   ;;  %s2805_s1 = inlined_call_operand.hbm [shape: f32[2,8,32], index: 1, kind: input, shape index: {}]   ;;  %s2806_s2 = inlined_call_operand.hbm [shape: f32[2,8,32], index: 2, kind: input, shape index: {}]   ;;  %s2807_s3 = inlined_call_operand.hbm [shape: f32[32,32], index: 3, kind: input, shape index: {}]   ;;  %s2808_s4 = inlined_call_operand.vmem [shape: f32[1,32], index: 4, kind: input, shape index: {}]   ;;  %s2809_s5 = inlined_call_operand.hbm [shape: f32[32,32], index: 5, kind: input, shape index: {}]   ;;  %s2810_s6 = inlined_call_operand.vmem [shape: f32[1,32], index: 6, kind: input, shape index: {}]   ;;  %s2811_s7 = inlined_call_operand.hbm [shape: f32[32,32], index: 7, kind: input, shape index: {}]   ;;  %s2812_s8 = inlined_call_operand.hbm [shape: f32[1,32], index: 8, kind: input, shape index: {}]   ;;  %s2813_s9 = inlined_call_operand.vmem [shape: f32[32,32], index: 9, kind: input, shape index: {}]   ;;  %s2814_s10 = inlined_call_operand.vmem [shape: f32[1,32], index: 10, kind: input, shape index: {}]   ;;  %s2815_s11 = inlined_call_operand.hbm [shape: f32[2,8,32], index: 11, kind: output, shape index: {0}]   ;;  %s2816_s12 = inlined_call_operand.vmem [shape: f32[2,4,2,2], index: 12, kind: output, shape index: {1}]  }
   0x1   :  { %2841 = sst [smem:[#allocation29_spill]] %s2805_s1 }
   0x2   :  { %2842 = sst [smem:[#allocation30_spill]] %s2807_s3 }
   0x3   :  { %2843 = sst [smem:[#allocation31_spill]] %s2808_s4 }
   0x4   :  { %2844 = sst [smem:[#allocation32_spill]] %s2811_s7 }
   0x5   :  { %2845 = sst [smem:[#allocation33_spill]] %s2813_s9 }
   0x6   :  { %2846 = sst [smem:[#allocation34_spill]] %s2814_s10 }
   0x7   :  { %2847 = sst [smem:[#allocation35_spill]] %s2815_s11 }
   0x8   :  { %2848 = sst [smem:[#allocation36_spill]] %s2816_s12 }
   0x9   :  { %18 = vsyncpa [#allocation6], 0 }
   0xa   :  { %20 = vsyncpa [#allocation6 + $0x1], 0 }
   0xb   :  { %21 = vsyncpa [#allocation9], 0 }
   0xc   :  { %23 = vsyncpa [#allocation9 + $0x1], 0 }
   0xd   :  { %24 = vsyncpa [#allocation12], 0 }
   0xe   :  { %25 = vsyncpa [#allocation15], 0 }
   0xf   :  { %26 = vsyncpa [#allocation7], 0 }
  0x10   :  { %28 = vsyncpa [#allocation7 + $0x1], 0  ;;  %s2341_s21 = smov 0   ;;  %s2343_s22 = smov 0  }
  0x11   :  { %s2345_s23 = smov 0   ;;  %s2347_s24 = smov 0  }
  0x12 LB: > { %2849 = sst [smem:[#allocation23_spill]] %s2249_s21  ;;  %s2263_s25 = smov [#allocation11]   ;;  %s2261_s24 = sphi %s2347_s24, %s2892_s24   ;;  %s2257_s23 = sphi %s2345_s23, %s2896_s23   ;;  %s2253_s22 = sphi %s2343_s22, %s2895_s22   ;;  %s2249_s21 = sphi %s2341_s21, %s2894_s21  }
  0x13   : > { %2850 = sst [smem:[#allocation24_spill]] %s2261_s24  ;;  %s349_s26 = sshll.u32 %s2263_s25, 4  ;;  %s2367_s26 = int_to_ptr.vmem [resolvable:$true] %s349_s26 }
  0x14   : > { %s2362_s27 = sadd.s32 4294967295, %s2261_s24   ;;  %p1675_p0 = scmp.ge.s32.totalorder %s2261_s24, 1 }
  0x15   : > { %p2828_p1 = scmp.eq.s32.totalorder %s2362_s27, 0  ;;  %p337_p2 = scmp.lt.s32.totalorder %s2261_s24, 3 }
  0x16   : > { %s2264_s29 = smov [#allocation14]   ;;  %s2853_s3 = sld [smem:[#allocation30_spill]] }
  0x17   : > { %p2369_p3 = pnand %p1675_p0, %p337_p2  ;;  %s381_s30 = sshll.u32 %s2264_s29, 4  ;;  %s2382_s30 = int_to_ptr.vmem [resolvable:$true] %s381_s30 }
  0x19   : > { %s2851_s28 = scalar_select %p2369_p3, 1, 0 }
  0x1a   : > { %p1887_p5 = pneg %p2369_p3 }
  0x1c   : > { %p2378_p6 = pnand %p1887_p5, %p2828_p1  ;;  %s1981_s16 = scalar_lea.hbm %s2853_s3, 512 }
  0x1d   : > { %p1982_p7 = scmp.ne.s32.totalorder %s2853_s3, %s1981_s16  ;;  %p1988_p11 = scmp.lt.u32.totalorder %s1981_s16, %s2853_s3 }
  0x1e   : > { %s2852_s13 = scalar_select %p2378_p6, 1, 0 }
  0x1f   : > { %p2392_p8 = pneg %p2378_p6 }
  0x21   : > { %s2854_s19 = scalar_select %p2392_p8, 1, 0 }
  0x22   : > { %p1984_p9 = pnand %p2392_p8, %p1982_p7 }
  0x24   : > { %p1985_p10 = pneg %p1984_p9 }
  0x26   : > { %p1990_p12 = pnand %p1988_p11, %p1985_p10 }
  0x28   : > { %1993 = shalt.err (!%p1990_p12)
}
  0x29   : > { %s1994_s29 = scalar_lea.vmem %s2367_s26, 512  ;;  %p2002_p5 = scmp.lt.s32.totalorder %s2367_s26, %s2367_s26 }
  0x2a   : > { %p1995_p13 = scmp.ne.s32.totalorder %s2367_s26, %s1994_s29  ;;  %p2003_p4 = scmp.lt.s32.totalorder %s1994_s29, %s1994_s29 }
  0x2c   : > { %p1997_p0 = pnand %p1995_p13, %p2392_p8  ;;  %p2004_p7 = por %p2003_p4, %p2002_p5 }
  0x2e   : > { %p1998_p2 = pneg %p1997_p0 }
  0x30   : > { %p2005_p9 = pnand %p2004_p7, %p1998_p2 }
  0x32   : > { %2008 = shalt.err (!%p2005_p9)
}
  0x33   : > { %s2820_s14 = smov 128   ;;  %s2821_s15 = smov 8  }
  0x34   : > { %1890 = dma.hbm_to_vmem [thread:$0]  (!%p2378_p6), %s2853_s3, 512, %s2367_s26, [#allocation12], %s2820_s14, %s2820_s14, %s2821_s15  }
  0x35   : > { %s2855_s7 = sld [smem:[#allocation32_spill]] }
  0x3b   : > { %s2009_s25 = scalar_lea.hbm %s2855_s7, 512 }
  0x3c   : > { %p2010_p4 = scmp.ne.s32.totalorder %s2855_s7, %s2009_s25  ;;  %p2016_p12 = scmp.lt.u32.totalorder %s2009_s25, %s2855_s7 }
  0x3e   : > { %p2012_p10 = pnand %p2010_p4, %p2392_p8 }
  0x40   : > { %p2013_p11 = pneg %p2012_p10 }
  0x42   : > { %p2018_p13 = pnand %p2016_p12, %p2013_p11 }
  0x44   : > { %2021 = shalt.err (!%p2018_p13)
}
  0x45   : > { %s2022_s26 = scalar_lea.vmem %s2382_s30, 512  ;;  %p2030_p7 = scmp.lt.s32.totalorder %s2382_s30, %s2382_s30 }
  0x46   : > { %p2023_p0 = scmp.ne.s32.totalorder %s2382_s30, %s2022_s26  ;;  %p2031_p9 = scmp.lt.s32.totalorder %s2022_s26, %s2022_s26 }
  0x48   : > { %p2025_p2 = pnand %p2023_p0, %p2392_p8  ;;  %p2032_p4 = por %p2031_p9, %p2030_p7 }
  0x4a   : > { %p2026_p5 = pneg %p2025_p2 }
  0x4c   : > { %p2033_p10 = pnand %p2032_p4, %p2026_p5 }
  0x4e   : > { %2036 = shalt.err (!%p2033_p10)
}
  0x4f   : > { %1896 = dma.hbm_to_vmem [thread:$0]  (!%p2378_p6), %s2855_s7, 512, %s2382_s30, [#allocation15], %s2820_s14, %s2820_s14, %s2821_s15  }
  0x50   : > { %s1674_s11 = sadd.s32 4294967294, %s2261_s24   ;;  %s2444_s16 = sadd.s32 1, %s2261_s24  }
  0x51   : > { %2856 = sst [smem:[#allocation25_spill]] %s2444_s16  ;;  %s38_s17 = ssub.s32 %s2261_s24, %s2444_s16 }
  0x52   : > { %s41_s18 = sadd.s32 1, %s2257_s23  ;;  %p39_p11 = scmp.eq.s32.totalorder %s38_s17, 0 }
  0x53   : > { %p48_p12 = scmp.ne.s32.totalorder %s2257_s23, %s2253_s22  ;;  %p49_p13 = scmp.eq.s32.totalorder %s2261_s24, 0 }
  0x54   : > { %p54_p0 = scmp.ne.s32.totalorder %s2253_s22, %s2249_s21  ;;  %p298_p7 = scmp.eq.s32.totalorder %s2362_s27, 1 }
  0x55   : > { %s2455_s20 = scalar_select %p39_p11, %s2257_s23, %s41_s18  }
  0x56   : > { %p50_p2 = por %p49_p13, %p48_p12  ;;  %p2459_p5 = por %p2828_p1, %p54_p0 }
  0x57   : > { %2857 = sst [smem:[#allocation26_spill]] %s2455_s20  ;;  %p304_p9 = scmp.eq.s32.totalorder %s1674_s11, 1 }
  0x58   : > { %s2858_s25 = scalar_select %p2459_p5, 1, 0 }
  0x59   : > { %p1918_p4 = scmp.lt.s32.totalorder %s2261_s24, 2  ;;  %s2822_s30 = sand.u32 1, %s2257_s23  }
  0x5a   : > { %p2466_p10 = por %p298_p7, %p48_p12  ;;  %p2470_p3 = por %p304_p9, %p54_p0 }
  0x5b   : > { %s2476_s9 = sshll.u32 %s2822_s30, 3  ;;  %s2479_s10 = sshll.u32 %s2261_s24, 7 }
  0x5c   : > { %s2859_s29 = scalar_select %p2466_p10, 1, 0 }
  0x5d   : > { %s2861_s26 = scalar_select %p2470_p3, 1, 0 }
  0x5e   : > { %2860 = sst [smem:[#allocation27_spill]] %s2859_s29  ;;  %p2481_p11 = pnand %p1918_p4, %p50_p2 }
  0x5f   : > { %2862 = sst [smem:[#allocation28_spill]] %s2861_s26  ;;  %s430_s11 = sand.u32 1, %s2261_s24  }
  0x60   : > { %s2863_s17 = scalar_select %p2481_p11, 1, 0 }
  0x61   : > { %s2864_s1 = sld [smem:[#allocation29_spill]]  ;;  %s434_s30 = scalar_lea.vmem [#allocation8], %s2476_s9 }
  0x62   : > { %s441_s3 = sshll.u32 %s434_s30, 4  ;;  %s2267_s7 = smov [#allocation13]   ;;  %s2493_s3 = int_to_ptr.vmem [resolvable:$true] %s441_s3 }
  0x63   : > { %s2495_s20 = sshll.u32 %s2267_s7, 4  ;;  %s2497_s16 = scalar_lea.sflag [#allocation9], %s430_s11  ;;  %s366_s20 = int_to_ptr.vmem [resolvable:$true] %s2495_s20 }
  0x64   : > { %p2503_p13 = pneg %p2481_p11 }
  0x66   : > { %s2865_s14 = scalar_select %p2503_p13, 1, 0 }
  0x67   : > { %s2490_s15 = scalar_lea.hbm %s2864_s1, %s2479_s10  ;;  %s2042_s24 = scalar_lea.hbm %s2864_s1, 256 }
  0x68   : > { %s2037_s26 = scalar_lea.hbm %s2490_s15, 128  ;;  %p2043_p7 = scmp.lt.u32.totalorder %s2490_s15, %s2864_s1 }
  0x69   : > { %p2038_p12 = scmp.ne.s32.totalorder %s2490_s15, %s2037_s26  ;;  %p2044_p9 = scmp.lt.u32.totalorder %s2042_s24, %s2037_s26 }
  0x6a   : > { %p2046_p1 = scmp.lt.u32.totalorder %s2037_s26, %s2490_s15 }
  0x6b   : > { %p2040_p0 = pnand %p2503_p13, %p2038_p12  ;;  %p2045_p4 = por %p2044_p9, %p2043_p7 }
  0x6d   : > { %p2041_p2 = pneg %p2040_p0  ;;  %p2047_p3 = por %p2046_p1, %p2045_p4 }
  0x6f   : > { %p2048_p10 = pnand %p2047_p3, %p2041_p2 }
  0x71   : > { %2051 = shalt.err (!%p2048_p10)
}
  0x72   : > { %s2052_s11 = scalar_lea.vmem %s2493_s3, 128  ;;  %s2268_s18 = smov [#allocation8]  }
  0x73   : > { %p2053_p12 = scmp.ne.s32.totalorder %s2493_s3, %s2052_s11  ;;  %s2057_s30 = sshll.u32 %s2268_s18, 4  ;;  %s2058_s30 = int_to_ptr.vmem [resolvable:$false] %s2057_s30 }
  0x74   : > { %s2059_s21 = scalar_lea.vmem %s2058_s30, 256  ;;  %p2060_p6 = scmp.lt.s32.totalorder %s2493_s3, %s2058_s30 }
  0x75   : > { %p2055_p0 = pnand %p2053_p12, %p2503_p13  ;;  %p2061_p8 = scmp.lt.s32.totalorder %s2059_s21, %s2052_s11 }
  0x77   : > { %p2056_p5 = pneg %p2055_p0  ;;  %p2062_p7 = por %p2061_p8, %p2060_p6 }
  0x79   : > { %p2063_p9 = pnand %p2062_p7, %p2056_p5 }
  0x7b   : > { %2066 = shalt.err (!%p2063_p9)
}
  0x7c   : > { %1906 = dma.hbm_to_vmem [thread:$0]  (!%p2481_p11), %s2490_s15, 128, %s2493_s3, %s2497_s16  }
  0x7d   : > { %s2067_s7 = scalar_lea.hbm %s2809_s5, 512  ;;  %p2866_p3 = scmp.ne.s32.totalorder %s2854_s19, 0 }
  0x7e   : > { %p2068_p1 = scmp.ne.s32.totalorder %s2809_s5, %s2067_s7  ;;  %p2074_p5 = scmp.lt.u32.totalorder %s2067_s7, %s2809_s5 }
  0x80   : > { %p2070_p6 = pnand %p2068_p1, %p2866_p3 }
  0x82   : > { %p2071_p8 = pneg %p2070_p6 }
  0x84   : > { %p2076_p10 = pnand %p2074_p5, %p2071_p8 }
  0x86   : > { %2079 = shalt.err (!%p2076_p10)
}
  0x87   : > { %s2080_s21 = scalar_lea.vmem %s366_s20, 512  ;;  %p2088_p0 = scmp.lt.s32.totalorder %s366_s20, %s366_s20 }
  0x88   : > { %p2081_p2 = scmp.ne.s32.totalorder %s366_s20, %s2080_s21  ;;  %p2089_p7 = scmp.lt.s32.totalorder %s2080_s21, %s2080_s21 }
  0x8a   : > { %p2083_p4 = pnand %p2081_p2, %p2866_p3  ;;  %p2090_p9 = por %p2089_p7, %p2088_p0 }
  0x8c   : > { %p2084_p12 = pneg %p2083_p4 }
  0x8e   : > { %p2091_p11 = pnand %p2090_p9, %p2084_p12 }
  0x90   : > { %2094 = shalt.err (!%p2091_p11)
}
  0x91   : > { %p2867_p1 = scmp.ne.s32.totalorder %s2852_s13, 0  ;;  %s2868_s1 = smov 8  }
  0x92   : > { %s2869_s3 = smov 128   ;;  %s2269_s26 = smov [#allocation16]  }
  0x93   : > { %1893 = dma.hbm_to_vmem [thread:$0]  (!%p2867_p1), %s2809_s5, 512, %s366_s20, [#allocation12], %s2869_s3, %s2869_s3, %s2868_s1  }
  0x94   : > { %s395_s7 = sshll.u32 %s2269_s26, 4  ;;  %s2095_s30 = scalar_lea.hbm %s2812_s8, 16  ;;  %s396_s7 = int_to_ptr.vmem [resolvable:$true] %s395_s7 }
  0x95   : > { %p2096_p11 = scmp.ne.s32.totalorder %s2812_s8, %s2095_s30  ;;  %p2102_p5 = scmp.lt.u32.totalorder %s2095_s30, %s2812_s8 }
  0x97   : > { %p2098_p6 = pnand %p2096_p11, %p2866_p3 }
  0x99   : > { %p2099_p8 = pneg %p2098_p6 }
  0x9b   : > { %p2104_p10 = pnand %p2102_p5, %p2099_p8 }
  0x9d   : > { %2107 = shalt.err (!%p2104_p10)
}
  0x9e   : > { %s2108_s20 = scalar_lea.vmem %s396_s7, 16  ;;  %s2115_s1 = scalar_lea.vmem %s396_s7, 32 }
  0x9f   : > { %p2109_p2 = scmp.ne.s32.totalorder %s396_s7, %s2108_s20  ;;  %p2116_p0 = scmp.lt.s32.totalorder %s396_s7, %s396_s7 }
  0xa0   : > { %p2117_p7 = scmp.lt.s32.totalorder %s2115_s1, %s2108_s20 }
  0xa1   : > { %p2111_p4 = pnand %p2109_p2, %p2866_p3 }
  0xa2   : > { %p2118_p9 = por %p2117_p7, %p2116_p0 }
  0xa3   : > { %p2112_p12 = pneg %p2111_p4 }
  0xa5   : > { %p2119_p13 = pnand %p2118_p9, %p2112_p12 }
  0xa7   : > { %2122 = shalt.err (!%p2119_p13)
}
  0xa8   : > { %1899 = dma.hbm_to_vmem [thread:$0]  (!%p2867_p1), %s2812_s8, 16, %s396_s7, [#allocation15]  }
  0xa9   : > { %s2571_s19 = scalar_lea.hbm %s2804_s0, %s2479_s10  ;;  %s416_s15 = scalar_lea.vmem [#allocation5], %s2476_s9 }
  0xaa   : > { %s423_s24 = sshll.u32 %s416_s15, 4  ;;  %s2870_s13 = sand.u32 1, %s2257_s23   ;;  %s424_s24 = int_to_ptr.vmem [resolvable:$true] %s423_s24 }
  0xab   : > { %s413_s26 = scalar_lea.sflag [#allocation6], %s2870_s13  ;;  %s2123_s18 = scalar_lea.hbm %s2571_s19, 128 }
  0xac   : > { %p2124_p13 = scmp.ne.s32.totalorder %s2571_s19, %s2123_s18  ;;  %p2871_p3 = scmp.ne.s32.totalorder %s2865_s14, 0 }
  0xad   : > { %s2128_s30 = scalar_lea.hbm %s2804_s0, 256  ;;  %p2129_p1 = scmp.lt.u32.totalorder %s2571_s19, %s2804_s0 }
  0xae   : > { %p2126_p11 = pnand %p2124_p13, %p2871_p3  ;;  %p2130_p8 = scmp.lt.u32.totalorder %s2128_s30, %s2123_s18 }
  0xaf   : > { %p2132_p10 = scmp.lt.u32.totalorder %s2123_s18, %s2571_s19 }
  0xb0   : > { %p2127_p6 = pneg %p2126_p11  ;;  %p2131_p5 = por %p2130_p8, %p2129_p1 }
  0xb2   : > { %p2133_p2 = por %p2132_p10, %p2131_p5 }
  0xb4   : > { %p2134_p4 = pnand %p2133_p2, %p2127_p6 }
  0xb6   : > { %2137 = shalt.err (!%p2134_p4)
}
  0xb7   : > { %s2138_s1 = scalar_lea.vmem %s424_s24, 128  ;;  %s2270_s29 = smov [#allocation5]  }
  0xb8   : > { %p2139_p12 = scmp.ne.s32.totalorder %s424_s24, %s2138_s1  ;;  %s2143_s3 = sshll.u32 %s2270_s29, 4  ;;  %s2144_s3 = int_to_ptr.vmem [resolvable:$false] %s2143_s3 }
  0xb9   : > { %s2145_s4 = scalar_lea.vmem %s2144_s3, 256  ;;  %p2146_p9 = scmp.lt.s32.totalorder %s424_s24, %s2144_s3 }
  0xba   : > { %p2141_p0 = pnand %p2139_p12, %p2871_p3  ;;  %p2147_p13 = scmp.lt.s32.totalorder %s2145_s4, %s2138_s1 }
  0xbc   : > { %p2142_p7 = pneg %p2141_p0  ;;  %p2148_p11 = por %p2147_p13, %p2146_p9 }
  0xbe   : > { %p2149_p1 = pnand %p2148_p11, %p2142_p7 }
  0xc0   : > { %2152 = shalt.err (!%p2149_p1)
}
  0xc1   : > { %p2872_p8 = scmp.ne.s32.totalorder %s2863_s17, 0  ;;  %s2597_s13 = scalar_lea.hbm %s2806_s2, %s2479_s10 }
  0xc2   : > { %s452_s18 = scalar_lea.vmem [#allocation10], %s2476_s9  ;;  %s2153_s11 = scalar_lea.hbm %s2597_s13, 128 }
  0xc3   : > { %1903 = dma.hbm_to_vmem [thread:$0]  (!%p2872_p8), %s2571_s19, 128, %s424_s24, %s413_s26  }
  0xc4   : > { %s459_s7 = sshll.u32 %s452_s18, 4  ;;  %p2154_p6 = scmp.ne.s32.totalorder %s2597_s13, %s2153_s11  ;;  %s460_s7 = int_to_ptr.vmem [resolvable:$true] %s459_s7 }
  0xc5   : > { %s2158_s19 = scalar_lea.hbm %s2806_s2, 256  ;;  %p2159_p2 = scmp.lt.u32.totalorder %s2597_s13, %s2806_s2 }
  0xc6   : > { %p2156_p5 = pnand %p2154_p6, %p2871_p3  ;;  %p2160_p4 = scmp.lt.u32.totalorder %s2158_s19, %s2153_s11 }
  0xc7   : > { %p2162_p0 = scmp.lt.u32.totalorder %s2153_s11, %s2597_s13 }
  0xc8   : > { %p2157_p10 = pneg %p2156_p5  ;;  %p2161_p12 = por %p2160_p4, %p2159_p2 }
  0xca   : > { %p2163_p7 = por %p2162_p0, %p2161_p12 }
  0xcc   : > { %p2164_p9 = pnand %p2163_p7, %p2157_p10 }
  0xce   : > { %2167 = shalt.err (!%p2164_p9)
}
  0xcf   : > { %s2168_s9 = scalar_lea.vmem %s460_s7, 128  ;;  %s2271_s10 = smov [#allocation10]  }
  0xd0   : > { %p2169_p13 = scmp.ne.s32.totalorder %s460_s7, %s2168_s9  ;;  %s2173_s20 = sshll.u32 %s2271_s10, 4  ;;  %s2174_s20 = int_to_ptr.vmem [resolvable:$false] %s2173_s20 }
  0xd1   : > { %s2175_s1 = scalar_lea.vmem %s2174_s20, 256  ;;  %p2176_p6 = scmp.lt.s32.totalorder %s460_s7, %s2174_s20 }
  0xd2   : > { %p2171_p11 = pnand %p2169_p13, %p2871_p3  ;;  %p2177_p5 = scmp.lt.s32.totalorder %s2175_s1, %s2168_s9 }
  0xd4   : > { %p2172_p1 = pneg %p2171_p11  ;;  %p2178_p8 = por %p2177_p5, %p2176_p6 }
  0xd6   : > { %p2179_p2 = pnand %p2178_p8, %p2172_p1 }
  0xd8   : > { %2182 = shalt.err (!%p2179_p2)
}
  0xd9   : > { %p2873_p4 = scmp.ne.s32.totalorder %s2863_s17, 0  ;;  %p2874_p10 = scmp.ne.s32.totalorder %s2851_s28, 0 }
  0xda   : > { %s2621_s14 = sand.u32 (!%p2874_p10), 1, %s2253_s22   ;;  %p2875_p3 = scmp.ne.s32.totalorder (!%p2874_p10), %s2858_s25, 0 }
  0xdb   : > { %1909 = dma.hbm_to_vmem [thread:$0]  (!%p2873_p4), %s2597_s13, 128, %s460_s7, %s2497_s16  }
  0xdc   : > { %468 = sbr.rel (%p2874_p10) target bundleno = 1998 (0x7ce), region = 64  ;;  %s2624_s29 = sshll.u32 (!%p2874_p10), %s2621_s14, 3 }
  0xdd   : > { %s471_s3 = scalar_lea.sflag (!%p2874_p10), [#allocation6], %s2621_s14  ;;  %s474_s4 = scalar_lea.vmem (!%p2874_p10), [#allocation5], %s2624_s29 }
  0xe3   : > { %2228 = dma.done.wait (%p2875_p3), %s471_s3, 128  }
  0xe4   : > { %2230 = vsyncadd (%p2875_p3), %s471_s3, 4294967168  ;;  %s479_s28 = sand.u32 1, %s2362_s27   ;;  %s483_s17 = scalar_lea.vmem [#allocation8], %s2624_s29 }
  0xe5   : > { %s480_s16 = scalar_lea.sflag [#allocation9], %s479_s28 }
  0xe6   : > { %2232 = dma.done.wait (%p2875_p3), %s480_s16, 256  }
  0xe7   : > { %2234 = vsyncadd (%p2875_p3), %s480_s16, 4294967040  ;;  %s492_s12 = scalar_lea.vmem [#allocation10], %s2624_s29  ;;  %p2876_p8 = scmp.eq.s32.totalorder %s2362_s27, 0 }
  0xe9   : > { %2236 = dma.done.wait (%p2876_p8), [#allocation12], 1024   ;;  %p2877_p12 = pmov %p2876_p8 }
  0xea   : > { %p2878_p0 = pmov %p2876_p8 }
  0xeb   : > { %2238 = vsyncadd (%p2877_p12), [#allocation12], 4294966272 }
  0xec   : > { %2240 = dma.done.wait (%p2878_p0), [#allocation15], 528   ;;  %p2879_p7 = pmov %p2878_p0 }
  0xed   : > { %v2272_v0 = vmov 0.0|0.0   ;;  %vm2273_vm0 = vmmov 0   ;;  %v2274_v1 = vmov 0.0   ;;  %v658_v2 = vld [vmem:[#allocation13] sm:$0xff]  ;;  %v659_v3 = vld [vmem:[#allocation13 + $0x8] sm:$0xff]  ;;  %v660_v7 = vld [vmem:[#allocation13 + $0x10] sm:$0xff] }
  0xee   : > { %2242 = vsyncadd (%p2879_p7), [#allocation15], 4294966768  ;;  %1851 = vmatprep.subr.bf16.mxu1 %v2272_v0  ;;  %1845 = vmatprep.subr.bf16.mxu0 %v2272_v0  ;;  %v571_v4 = vld [vmem:[#allocation11] sm:$0xff]  ;;  %v1852_v5 = vpack.c.bf16 %v659_v3, %v658_v2  ;;  %v572_v6 = vld [vmem:[#allocation11 + $0x8] sm:$0xff]  ;;  %vm582_vm1 = vcmask 261120   ;;  %s2880_s7 = sld [smem:[#allocation31_spill]] }
  0xef   : > { %1779 = vmatprep.mubr.msk.f32.mxu1 %vm2273_vm0, %v2274_v1  ;;  %1768 = vmatprep.mubr.msk.f32.mxu0 %vm2273_vm0, %v2274_v1  ;;  %v661_v8 = vld [vmem:[#allocation13 + $0x18] sm:$0xff]  ;;  %v1846_v9 = vpack.c.bf16 %v572_v6, %v571_v4  ;;  %v573_v10 = vld [vmem:[#allocation11 + $0x10] sm:$0xff]  ;;  %v744_v14 = vld [vmem:[#allocation14] sm:$0xff]  ;;  %vm931_vm2 = vcmask 1040384   ;;  %vm911_vm3 = vcmask 9216   ;;  %p564_p9 = scmp.lt.s32.totalorder %s2362_s27, 1 }
  0xf0   : > { %v574_v11 = vld [vmem:[#allocation11 + $0x18] sm:$0xff]  ;;  %1853 = vmatpush3.bf16.msra.mxu1 %v1852_v5  ;;  %v1855_v12 = vpack.c.bf16 %v661_v8, %v660_v7  ;;  %v745_v15 = vld [vmem:[#allocation14 + $0x8] sm:$0xff]  ;;  %v746_v19 = vld [vmem:[#allocation14 + $0x10] sm:$0xff]  ;;  %s2881_s24 = sld [smem:[#allocation36_spill]]  ;;  %vm927_vm4 = vcmask 15360   ;;  %s2882_s20 = sld [smem:[#allocation33_spill]] }
  0xf1   : > { %1847 = vmatpush3.bf16.msra.mxu0 %v1846_v9  ;;  %1854 = vmatprep.subr.bf16.mxu1 %v2272_v0  ;;  %v1849_v13 = vpack.c.bf16 %v574_v11, %v573_v10  ;;  %v657_v16 = vld [vmem:[%s483_s17] sm:$0xff]  ;;  %v570_v17 = vld [vmem:[%s474_s4] sm:$0xff]  ;;  %v1858_v18 = vpack.c.bf16 %v745_v15, %v744_v14  ;;  %s565_s11 = scalar_select %p564_p9, %s2362_s27, 1 }
  0xf2   : > { %1848 = vmatprep.subr.bf16.mxu0 %v2272_v0  ;;  %v747_v20 = vld [vmem:[#allocation14 + $0x18] sm:$0xff]  ;;  %v1702_v35 = vld [vmem:[#allocation16] ss:$0 sm:$0xff]  ;;  %s2883_s15 = sld [smem:[#allocation34_spill]]  ;;  %s2884_s13 = sld [smem:[#allocation27_spill]] }
  0xf3   : > { %v1861_v21 = vpack.c.bf16 %v747_v20, %v746_v19  ;;  %v743_v22 = vld [vmem:[%s492_s12] sm:$0xff]  ;;  %s1725_s30 = sshll.u32 %s565_s11, 3  ;;  %s1722_s18 = sshll.u32 %s2362_s27, 7 }
  0xf4   : > { %1856 = vmatpush3.bf16.msra.mxu1 %v1855_v12  ;;  %v1700_v23 = vld [vmem:[%s2810_s6] ss:$0 sm:$0xff]  ;;  %s2885_s19 = sld [smem:[#allocation35_spill]]  ;;  %s1477_s27 = scalar_lea.sflag [#allocation7], %s2621_s14 }
  0xf5   : > { %1850 = vmatpush3.bf16.msra.mxu0 %v1849_v13  ;;  %1793 = vmatprep.subr.mxu1 %v2274_v1  ;;  %v1698_v24 = vld [vmem:[%s2880_s7] ss:$0 sm:$0xff]  ;;  %s556_s7 = scalar_lea.vmem [#allocation17], %s2624_s29 }
  0xf6   : > { %1857 = vmatprep.subr.bf16.mxu0 %v2272_v0  ;;  %s2700_s26 = scalar_lea.vmem %s2881_s24, %s1725_s30  ;;  %s1495_s11 = sshll.u32 %s556_s7, 4  ;;  %s2761_s11 = int_to_ptr.vmem [resolvable:$true] %s1495_s11 }
  0xf7   : > { %1780 = vmatmul.mubr.msk.f32.vlgmr.msra.gmra.mrb[0].mxu1 %vm582_vm1, %v657_v16  ;;  %s2183_s29 = scalar_lea.vmem %s2761_s11, 128 }
  0xf8   : > { %1769 = vmatmul.mubr.msk.f32.vlgmr.msra.gmra.mrb[0].mxu0 %vm582_vm1, %v570_v17  ;;  %1795 = vmatprep.mubr.msk.f32.mxu1 %vm2273_vm0, %v2274_v1  ;;  %p2184_p13 = scmp.ne.s32.totalorder %s2761_s11, %s2183_s29  ;;  %p2886_p11 = scmp.ne.s32.totalorder %s2884_s13, 0 }
  0xf9   : > { %1859 = vmatpush3.bf16.msra.mxu0 %v1858_v18  ;;  %1790 = vmatprep.mubr.msk.f32.mxu0 %vm2273_vm0, %v2274_v1 }
  0xfa   : > { %1860 = vmatprep.subr.bf16.mxu0 %v2272_v0  ;;  %s2759_s24 = scalar_lea.hbm %s2885_s19, %s1722_s18  ;;  %p2185_p1 = pnand %p2184_p13, %p2886_p11 }
  0xfc   : > { %p2186_p6 = pneg %p2185_p1 }
  0xfd   : > { %1862 = vmatpush3.bf16.msra.mxu0 %v1861_v21 }
  0xfe   : > { %1804 = vmatprep.subr.mxu0 %v2274_v1 }
 0x100   : > { %1791 = vmatmul.mubr.msk.f32.vlgmr.msra.gmra.mrb[2].mxu0 %vm582_vm1, %v743_v22 }
 0x101   : > { %1806 = vmatprep.mubr.msk.f32.mxu0 %vm2273_vm0, %v2274_v1 }
 0x1ca   : > { %v738_v25 = vpop.f32.mrb[0].mxu1 }
 0x1cb   : > { %v739_v26 = vadd.f32 %v1700_v23, %v738_v25  ;;  %v1781_v27 = vpop.f32.mrb[1].mxu1  ;;  %v652_v28 = vpop.f32.mrb[0].mxu0 }
 0x1cc   : > { %v653_v29 = vadd.f32 %v1698_v24, %v652_v28  ;;  %v1770_v30 = vpop.f32.mrb[1].mxu0 }
 0x1cd   : > { %742 = vst.msk [vmem:[#allocation3] sm:$0xff] %vm582_vm1, %v739_v26 }
 0x1ce   : > { %656 = vst.msk [vmem:[#allocation2] sm:$0xff] %vm582_vm1, %v653_v29 }
 0x1d3   : > { %v824_v36 = vpop.f32.mrb[2].mxu0 }
 0x1d4   : > { %v830_v31 = vld [vmem:[#allocation3] ss:$4 sm:$0x3]  ;;  %v979_v32 = vld [vmem:[#allocation3 + $0x1] ss:$4 sm:$0x3]  ;;  %v825_v37 = vadd.f32 %v1702_v35, %v824_v36 }
 0x1d5   : > { %1794 = vmatpush3.xpose.msk.msra.mxu1 %vm582_vm1, %v830_v31  ;;  %1805 = vmatpush3.xpose.msk.msra.mxu0 %vm582_vm1, %v979_v32  ;;  %v829_v33 = vld [vmem:[#allocation2] ss:$4 sm:$0x3]  ;;  %v977_v34 = vld [vmem:[#allocation2 + $0x1] ss:$4 sm:$0x3] }
 0x1d6   : > { %1798 = vmatprep.subr.bf16.mxu1 %v2274_v1  ;;  %1809 = vmatprep.subr.bf16.mxu0 %v2274_v1  ;;  %v1792_v38 = vpop.f32.mrb[3].mxu0  ;;  %828 = vst.msk [vmem:[#allocation4] sm:$0xff] %vm582_vm1, %v825_v37  ;;  %v1126_v9 = vld [vmem:[#allocation3 + $0x2] ss:$4 sm:$0x3] }
 0x1d7   : > { %v1273_v12 = vld [vmem:[#allocation3 + $0x3] ss:$4 sm:$0x3]  ;;  %v1124_v15 = vld [vmem:[#allocation2 + $0x2] ss:$4 sm:$0x3] }
 0x1d8   : > { %1796 = vmatmul.mubr.msk.f32.vlgmr.msra.gmra.mrb[2].mxu1 %vm582_vm1, %v829_v33  ;;  %1807 = vmatmul.mubr.msk.f32.vlgmr.msra.gmra.mrb[4].mxu0 %vm582_vm1, %v977_v34  ;;  %v1271_v18 = vld [vmem:[#allocation2 + $0x3] ss:$4 sm:$0x3] }
 0x1d9   : > { %1800 = vmatprep.mubr.msk.bf16.mxu1 %vm2273_vm0, %v2274_v1  ;;  %1811 = vmatprep.mubr.msk.bf16.mxu0 %vm2273_vm0, %v2274_v1 }
 0x1dd   : > { %v831_v39 = vld [vmem:[#allocation4] ss:$4 sm:$0x3]  ;;  %v981_v41 = vld [vmem:[#allocation4 + $0x1] ss:$4 sm:$0x3] }
 0x1de   : > { %v926_v40 = vpack.c.bf16 %v831_v39, %v831_v39  ;;  %v1075_v42 = vpack.c.bf16 %v981_v41, %v981_v41  ;;  %v1128_v10 = vld [vmem:[#allocation4 + $0x2] ss:$4 sm:$0x3]  ;;  %v1275_v14 = vld [vmem:[#allocation4 + $0x3] ss:$4 sm:$0x3] }
 0x1df   : > { %v1222_v13 = vpack.c.bf16 %v1128_v10, %v1128_v10  ;;  %v1369_v17 = vpack.c.bf16 %v1275_v14, %v1275_v14 }
 0x1e0   : > { %v933_v43 = vsel %vm931_vm2, %v926_v40, 0  ;;  %v1080_v44 = vsel %vm931_vm2, %v1075_v42, 0 }
 0x1e1   : > { %1799 = vmatpush3.bf16.msra.mxu1 %v933_v43  ;;  %1810 = vmatpush3.bf16.msra.mxu0 %v1080_v44  ;;  %v1227_v16 = vsel %vm931_vm2, %v1222_v13, 0  ;;  %v1374_v19 = vsel %vm931_vm2, %v1369_v17, 0 }
 0x1e2   : > { %1815 = vmatprep.subr.mxu1 %v2274_v1  ;;  %1826 = vmatprep.subr.mxu0 %v2274_v1 }
 0x2ab   : > { %v904_v45 = vpop.f32.mrb[2].mxu1  ;;  %v1054_v46 = vpop.f32.mrb[4].mxu0 }
 0x2ac   : > { %v909_v47 = vmul.f32 0.35355338, %v904_v45  ;;  %v1058_v48 = vmul.f32 0.35355338, %v1054_v46  ;;  %v1797_v49 = vpop.f32.mrb[3].mxu1  ;;  %v1808_v50 = vpop.f32.mrb[5].mxu0 }
 0x2ae   : > { %v910_v51 = vfloor.f32 %v909_v47  ;;  %v1059_v52 = vfloor.f32 %v1058_v48 }
 0x2b0   : > { %v912_v53 = vsel %vm911_vm3, %v910_v51, -inf  ;;  %v1060_v54 = vsel %vm911_vm3, %v1059_v52, -inf }
 0x2b1   : > { %913 = vmax.xlane.f32.xlu0 %v912_v53 }
 0x2b5   : > { %1061 = vmax.xlane.f32.xlu0 %v1060_v54 }
 0x33e   : > { %v914_v55 = vpop.xlane.xlu0 %913 }
 0x33f   : > { %v915_v56 = vsub.f32 %v910_v51, %v914_v55 }
 0x341   : > { %v916_v57 = vmul.f32 1.442695, %v915_v56  ;;  %v1419_v56 = vld [vmem:[%s2882_s20] sm:$0xff] }
 0x342   : > { %v1062_v58 = vpop.xlane.xlu0 %1061 }
 0x343   : > { %1965 = vpow2.f32 %v916_v57  ;;  %v1063_v59 = vsub.f32 %v1059_v52, %v1062_v58  ;;  %v1420_v57 = vld [vmem:[%s2882_s20 + $0x8] sm:$0xff]  ;;  %v1421_v58 = vld [vmem:[%s2882_s20 + $0x10] sm:$0xff] }
 0x345   : > { %v1064_v60 = vmul.f32 1.442695, %v1063_v59  ;;  %v1423_v59 = vpack.c.bf16 %v1420_v57, %v1419_v56 }
 0x347   : > { %1967 = vpow2.f32 %v1064_v60  ;;  %v1422_v60 = vld [vmem:[%s2882_s20 + $0x18] sm:$0xff] }
 0x34d   : > { %v1966_v61 = vpop.eup %1965 }
 0x34e   : > { %v918_v62 = vsel %vm911_vm3, %v1966_v61, 0.0 }
 0x34f   : > { %919 = vadd.xlane.f32.xlu1 %v918_v62 }
 0x351   : > { %v1968_v63 = vpop.eup %1967 }
 0x352   : > { %v1066_v0 = vsel %vm911_vm3, %v1968_v63, 0.0 }
 0x353   : > { %1067 = vadd.xlane.f32.xlu1 %v1066_v0 }
 0x3dc   : > { %v920_v2 = vpop.xlane.xlu1 %919 }
 0x3dd   : > { %1969 = vrcp.f32 %v920_v2 }
 0x3e0   : > { %v1068_v3 = vpop.xlane.xlu1 %1067 }
 0x3e1   : > { %1971 = vrcp.f32 %v1068_v3 }
 0x3e7   : > { %v1970_v4 = vpop.eup %1969 }
 0x3e8   : > { %v923_v5 = vmul.f32 %v1970_v4, %v1966_v61  ;;  %v1424_v61 = vpack.c.bf16 %v1422_v60, %v1421_v58 }
 0x3ea   : > { %924 = vst.msk [vmem:[%s2700_s26] sm:$0x3] %vm911_vm3, %v923_v5  ;;  %v925_v6 = vpack.c.bf16 %v923_v5, %v923_v5 }
 0x3eb   : > { %v1972_v7 = vpop.eup %1971 }
 0x3ec   : > { %v1071_v8 = vmul.f32 %v1972_v7, %v1968_v63  ;;  %1801 = vmatmul.mubr.msk.bf16.vlgmr.msra.gmra.mrb[4].mxu1 %vm927_vm4, %v925_v6 }
 0x3ed   : > { %1816 = vmatpush3.xpose.msk.msra.mxu1 %vm582_vm1, %v1126_v9  ;;  %1817 = vmatprep.mubr.msk.f32.mxu1 %vm2273_vm0, %v2274_v1 }
 0x3ee   : > { %1709 = vst.msk [vmem:[%s2700_s26 + $0x2] sm:$0x3] %vm911_vm3, %v1071_v8  ;;  %v1074_v11 = vpack.c.bf16 %v1071_v8, %v1071_v8  ;;  %1820 = vmatprep.subr.bf16.mxu1 %v2274_v1 }
 0x3f0   : > { %1812 = vmatmul.mubr.msk.bf16.vlgmr.msra.gmra.mrb[8].mxu0 %vm927_vm4, %v1074_v11 }
 0x3f1   : > { %1827 = vmatpush3.xpose.msk.msra.mxu0 %vm582_vm1, %v1273_v12  ;;  %1828 = vmatprep.mubr.msk.f32.mxu0 %vm2273_vm0, %v2274_v1 }
 0x3f2   : > { %1831 = vmatprep.subr.bf16.mxu0 %v2274_v1 }
 0x3f4   : > { %1818 = vmatmul.mubr.msk.f32.vlgmr.msra.gmra.mrb[8].mxu1 %vm582_vm1, %v1124_v15 }
 0x3f5   : > { %1821 = vmatpush3.bf16.msra.mxu1 %v1227_v16  ;;  %1822 = vmatprep.mubr.msk.bf16.mxu1 %vm2273_vm0, %v2274_v1 }
 0x3f6   : > { %1837 = vmatprep.subr.bf16.mxu1 %v2274_v1 }
 0x3f8   : > { %1829 = vmatmul.mubr.msk.f32.vlgmr.msra.gmra.mrb[6].mxu0 %vm582_vm1, %v1271_v18 }
 0x3f9   : > { %1832 = vmatpush3.bf16.msra.mxu0 %v1374_v19  ;;  %1833 = vmatprep.mubr.msk.bf16.mxu0 %vm2273_vm0, %v2274_v1 }
 0x4bf   : > { %v969_v20 = vpop.f32.mrb[4].mxu1 }
 0x4c0   : > { %975 = vst [vmem:[#allocation2] ss:$4 sm:$0x3] %v969_v20  ;;  %v1802_v21 = vpop.f32.mrb[5].mxu1 }
 0x4c1   : > { %v972_v22 = vpop.f32.mrb[6].mxu1 }
 0x4c2   : > { %v1803_v23 = vpop.f32.mrb[7].mxu1 }
 0x4c3   : > { %v1116_v24 = vpop.f32.mrb[8].mxu0 }
 0x4c4   : > { %1122 = vst [vmem:[#allocation2 + $0x1] ss:$4 sm:$0x3] %v1116_v24  ;;  %v1813_v25 = vpop.f32.mrb[9].mxu0 }
 0x4c5   : > { %v1119_v26 = vpop.f32.mrb[10].mxu0 }
 0x4c6   : > { %v1814_v27 = vpop.f32.mrb[11].mxu0 }
 0x4c7   : > { %v1201_v28 = vpop.f32.mrb[8].mxu1 }
 0x4c8   : > { %v1205_v29 = vmul.f32 0.35355338, %v1201_v28  ;;  %v1819_v30 = vpop.f32.mrb[9].mxu1 }
 0x4ca   : > { %v1206_v31 = vfloor.f32 %v1205_v29 }
 0x4cb   : > { %v1348_v32 = vpop.f32.mrb[6].mxu0 }
 0x4cc   : > { %v1352_v33 = vmul.f32 0.35355338, %v1348_v32  ;;  %v1830_v34 = vpop.f32.mrb[7].mxu0  ;;  %v1207_v35 = vsel %vm911_vm3, %v1206_v31, -inf }
 0x4cd   : > { %1208 = vmax.xlane.f32.xlu0 %v1207_v35 }
 0x4ce   : > { %v1353_v36 = vfloor.f32 %v1352_v33 }
 0x4d0   : > { %v1354_v37 = vsel %vm911_vm3, %v1353_v36, -inf }
 0x4d1   : > { %1355 = vmax.xlane.f32.xlu1 %v1354_v37 }
 0x55a   : > { %v1209_v38 = vpop.xlane.xlu0 %1208 }
 0x55b   : > { %v1210_v39 = vsub.f32 %v1206_v31, %v1209_v38 }
 0x55d   : > { %v1211_v40 = vmul.f32 1.442695, %v1210_v39 }
 0x55e   : > { %v1356_v41 = vpop.xlane.xlu1 %1355 }
 0x55f   : > { %1973 = vpow2.f32 %v1211_v40  ;;  %v1357_v42 = vsub.f32 %v1353_v36, %v1356_v41 }
 0x561   : > { %v1358_v43 = vmul.f32 1.442695, %v1357_v42 }
 0x563   : > { %1975 = vpow2.f32 %v1358_v43 }
 0x569   : > { %v1974_v44 = vpop.eup %1973 }
 0x56a   : > { %v1213_v45 = vsel %vm911_vm3, %v1974_v44, 0.0 }
 0x56b   : > { %1214 = vadd.xlane.f32.xlu0 %v1213_v45 }
 0x56d   : > { %v1976_v46 = vpop.eup %1975 }
 0x56e   : > { %v1360_v47 = vsel %vm911_vm3, %v1976_v46, 0.0 }
 0x56f   : > { %1361 = vadd.xlane.f32.xlu1 %v1360_v47 }
 0x5f8   : > { %v1215_v48 = vpop.xlane.xlu0 %1214 }
 0x5f9   : > { %1977 = vrcp.f32 %v1215_v48 }
 0x5fc   : > { %v1362_v49 = vpop.xlane.xlu1 %1361 }
 0x5fd   : > { %1979 = vrcp.f32 %v1362_v49 }
 0x603   : > { %v1978_v50 = vpop.eup %1977 }
 0x604   : > { %v1218_v51 = vmul.f32 %v1978_v50, %v1974_v44 }
 0x606   : > { %1713 = vst.msk [vmem:[%s2700_s26 + $0x4] sm:$0x3] %vm911_vm3, %v1218_v51  ;;  %v1221_v52 = vpack.c.bf16 %v1218_v51, %v1218_v51 }
 0x607   : > { %v1980_v53 = vpop.eup %1979 }
 0x608   : > { %v1365_v54 = vmul.f32 %v1980_v53, %v1976_v46  ;;  %1823 = vmatmul.mubr.msk.bf16.vlgmr.msra.gmra.mrb[12].mxu1 %vm927_vm4, %v1221_v52 }
 0x609   : > { %1841 = vmatprep.mubr.msk.bf16.mxu1 %vm2273_vm0, %v2274_v1  ;;  %1838 = vmatpush3.bf16.msra.mxu1 %v1423_v59 }
 0x60a   : > { %1717 = vst.msk [vmem:[%s2700_s26 + $0x6] sm:$0x3] %vm911_vm3, %v1365_v54  ;;  %v1368_v55 = vpack.c.bf16 %v1365_v54, %v1365_v54  ;;  %1839 = vmatprep.subr.bf16.mxu1 %v2274_v1  ;;  %v1719_v1 = vld [vmem:[%s2883_s15] ss:$0 sm:$0xff]  ;;  %s2275_s26 = smov [#allocation17]  }
 0x60b   : > { %s2187_s9 = sshll.u32 %s2275_s26, 4  ;;  %s2188_s9 = int_to_ptr.vmem [resolvable:$false] %s2187_s9 }
 0x60c   : > { %1834 = vmatmul.mubr.msk.bf16.vlgmr.msra.gmra.mrb[12].mxu0 %vm927_vm4, %v1368_v55  ;;  %s2189_s10 = scalar_lea.vmem %s2188_s9, 256  ;;  %p2190_p5 = scmp.lt.s32.totalorder %s2761_s11, %s2188_s9 }
 0x60d   : > { %1840 = vmatpush3.bf16.msra.mxu1 %v1424_v61  ;;  %p2191_p2 = scmp.lt.s32.totalorder %s2189_s10, %s2183_s29 }
 0x60f   : > { %p2192_p4 = por %p2191_p2, %p2190_p5 }
 0x611   : > { %p2193_p10 = pnand %p2192_p4, %p2186_p6 }
 0x6db   : > { %v1263_v62 = vpop.f32.mrb[12].mxu1 }
 0x6dc   : > { %1269 = vst [vmem:[#allocation2 + $0x2] ss:$4 sm:$0x3] %v1263_v62  ;;  %v1824_v63 = vpop.f32.mrb[13].mxu1 }
 0x6dd   : > { %v1266_v0 = vpop.f32.mrb[14].mxu1 }
 0x6de   : > { %v1825_v2 = vpop.f32.mrb[15].mxu1 }
 0x6df   : > { %v1410_v3 = vpop.f32.mrb[12].mxu0 }
 0x6e0   : > { %1416 = vst [vmem:[#allocation2 + $0x3] ss:$4 sm:$0x3] %v1410_v3  ;;  %v1835_v4 = vpop.f32.mrb[13].mxu0 }
 0x6e1   : > { %v1413_v5 = vpop.f32.mrb[14].mxu0 }
 0x6e2   : > { %v1836_v6 = vpop.f32.mrb[15].mxu0 }
 0x6e7   : > { %v1417_v7 = vld [vmem:[#allocation2] sm:$0xff] }
 0x6e8   : > { %v1418_v8 = vpack.c.bf16 %v1417_v7, %v1417_v7 }
 0x6ea   : > { %1842 = vmatmul.mubr.msk.bf16.vlgmr.msra.gmra.mrb[16].mxu1 %vm582_vm1, %v1418_v8 }
 0x7bd   : > { %v1469_v9 = vpop.f32.mrb[16].mxu1 }
 0x7be   : > { %v1470_v10 = vadd.f32 %v1719_v1, %v1469_v9  ;;  %v1843_v11 = vpop.f32.mrb[17].mxu1 }
 0x7bf   : > { %v1472_v12 = vpop.f32.mrb[18].mxu1 }
 0x7c0   : > { %v1844_v13 = vpop.f32.mrb[19].mxu1  ;;  %1475 = vst.msk [vmem:[%s556_s7] sm:$0xff] %vm582_vm1, %v1470_v10 }
 0x7c1   : > { %2196 = shalt.err (!%p2193_p10)
}
 0x7c2   : > { %s2197_s14 = scalar_lea.hbm %s2759_s24, 128  ;;  %s2201_s4 = scalar_lea.hbm %s2885_s19, 256 }
 0x7c3   : > { %p2198_p3 = scmp.ne.s32.totalorder %s2759_s24, %s2197_s14  ;;  %p2202_p0 = scmp.lt.u32.totalorder %s2759_s24, %s2885_s19 }
 0x7c4   : > { %p2203_p7 = scmp.lt.u32.totalorder %s2201_s4, %s2197_s14  ;;  %p2205_p13 = scmp.lt.u32.totalorder %s2197_s14, %s2759_s24 }
 0x7c5   : > { %p2199_p8 = pnand %p2198_p3, %p2886_p11 }
 0x7c6   : > { %p2204_p9 = por %p2203_p7, %p2202_p0 }
 0x7c7   : > { %p2200_p12 = pneg %p2199_p8 }
 0x7c8   : > { %p2206_p1 = por %p2205_p13, %p2204_p9 }
 0x7ca   : > { %p2207_p6 = pnand %p2206_p1, %p2200_p12 }
 0x7cc   : > { %2210 = shalt.err (!%p2207_p6)
}
 0x7cd   : > { %1885 = dma.vmem_to_hbm [thread:$0]  (%p2886_p11), %s2761_s11, 128, %s2759_s24, %s1477_s27  }
 0x7ce PF: > { %s2887_s17 = sld [smem:[#allocation23_spill]]  ;;  %s2888_s12 = sld [smem:[#allocation28_spill]] }
 0x7cf   : > { %s2889_s25 = sld [smem:[#allocation24_spill]] }
 0x7d4   : > { %s1510_s15 = sand.u32 1, %s2887_s17   ;;  %p2890_p5 = scmp.ne.s32.totalorder %s2888_s12, 0 }
 0x7d5   : > { %p2891_p2 = scmp.ge.s32.totalorder %s2889_s25, 2  ;;  %s1511_s18 = scalar_lea.sflag [#allocation7], %s1510_s15 }
 0x7d7   : > { %p1911_p4 = pnand %p2891_p2, %p2890_p5 }
 0x7d9   : > { %2244 = dma.done.wait (!%p1911_p4), %s1511_s18, 128  }
 0x7da   : > { %2246 = vsyncadd (!%p1911_p4), %s1511_s18, 4294967168  ;;  %s2892_s24 = sld [smem:[#allocation25_spill]]  ;;  %s2893_s7 = sld [smem:[#allocation26_spill]] }
 0x7db   : > { %s2894_s21 = smov %s2253_s22  ;;  %s2895_s22 = smov %s2257_s23 }
 0x7e0   : > { %p31_p10 = scmp.ge.s32.totalorder %s2892_s24, 4   ;;  %s2896_s23 = smov %s2893_s7 }
 0x7e2   :  { %33 = sbr.rel (!%p31_p10) target bundleno = 18 (0x12), region = 173 }
 0x7e9   :  { %1524 = vsyncpa [#allocation6], 1 }
 0x7ea   :  { %1526 = vsyncpa [#allocation6 + $0x1], 1 }
 0x7eb   :  { %1527 = vsyncpa [#allocation9], 1 }
 0x7ec   :  { %1529 = vsyncpa [#allocation9 + $0x1], 1 }
 0x7ed   :  { %1530 = vsyncpa [#allocation12], 1 }
 0x7ee   :  { %1531 = vsyncpa [#allocation15], 1 }
 0x7ef   :  { %1532 = vsyncpa [#allocation7], 1 }
 0x7f0   :  { %1534 = vsyncpa [#allocation7 + $0x1], 1 }

// kernel: tpu_custom_call.1
= control target key start
LH: loop header
LB: loop body
LE: loop exit
PB: predicated region body
PF: predicated region fallthrough
CT: control target
= control target key end

     0   :  { %s2804_s0 = inlined_call_operand.hbm [shape: f32[2,8,32], index: 0, kind: input, shape index: {}]   ;;  %s2805_s1 = inlined_call_operand.hbm [shape: f32[2,8,32], index: 1, kind: input, shape index: {}]   ;;  %s2806_s2 = inlined_call_operand.hbm [shape: f32[2,8,32], index: 2, kind: input, shape index: {}]   ;;  %s2807_s3 = inlined_call_operand.hbm [shape: f32[32,32], index: 3, kind: input, shape index: {}]   ;;  %s2808_s4 = inlined_call_operand.vmem [shape: f32[1,32], index: 4, kind: input, shape index: {}]   ;;  %s2809_s5 = inlined_call_operand.hbm [shape: f32[32,32], index: 5, kind: input, shape index: {}]   ;;  %s2810_s6 = inlined_call_operand.vmem [shape: f32[1,32], index: 6, kind: input, shape index: {}]   ;;  %s2811_s7 = inlined_call_operand.hbm [shape: f32[32,32], index: 7, kind: input, shape index: {}]   ;;  %s2812_s8 = inlined_call_operand.hbm [shape: f32[1,32], index: 8, kind: input, shape index: {}]   ;;  %s2813_s9 = inlined_call_operand.vmem [shape: f32[32,32], index: 9, kind: input, shape index: {}]   ;;  %s2814_s10 = inlined_call_operand.vmem [shape: f32[1,32], index: 10, kind: input, shape index: {}]   ;;  %s2815_s11 = inlined_call_operand.hbm [shape: f32[2,8,32], index: 11, kind: output, shape index: {0}]   ;;  %s2816_s12 = inlined_call_operand.vmem [shape: f32[2,4,2,2], index: 12, kind: output, shape index: {1}]  }
   0x1   :  { %2841 = sst [smem:[#allocation29_spill]] %s2805_s1 }
   0x2   :  { %2842 = sst [smem:[#allocation30_spill]] %s2807_s3 }
   0x3   :  { %2843 = sst [smem:[#allocation31_spill]] %s2808_s4 }
   0x4   :  { %2844 = sst [smem:[#allocation32_spill]] %s2811_s7 }
   0x5   :  { %2845 = sst [smem:[#allocation33_spill]] %s2813_s9 }
   0x6   :  { %2846 = sst [smem:[#allocation34_spill]] %s2814_s10 }
   0x7   :  { %2847 = sst [smem:[#allocation35_spill]] %s2815_s11 }
   0x8   :  { %2848 = sst [smem:[#allocation36_spill]] %s2816_s12 }
   0x9   :  { %18 = vsyncpa [#allocation6], 0 }
   0xa   :  { %20 = vsyncpa [#allocation6 + $0x1], 0 }
   0xb   :  { %21 = vsyncpa [#allocation9], 0 }
   0xc   :  { %23 = vsyncpa [#allocation9 + $0x1], 0 }
   0xd   :  { %24 = vsyncpa [#allocation12], 0 }
   0xe   :  { %25 = vsyncpa [#allocation15], 0 }
   0xf   :  { %26 = vsyncpa [#allocation7], 0 }
  0x10   :  { %28 = vsyncpa [#allocation7 + $0x1], 0  ;;  %s2341_s21 = smov 0   ;;  %s2343_s22 = smov 0  }
  0x11   :  { %s2345_s23 = smov 0   ;;  %s2347_s24 = smov 0  }
  0x12 LB: > { %2849 = sst [smem:[#allocation23_spill]] %s2249_s21  ;;  %s2263_s25 = smov [#allocation11]   ;;  %s2261_s24 = sphi %s2347_s24, %s2892_s24   ;;  %s2257_s23 = sphi %s2345_s23, %s2896_s23   ;;  %s2253_s22 = sphi %s2343_s22, %s2895_s22   ;;  %s2249_s21 = sphi %s2341_s21, %s2894_s21  }
  0x13   : > { %2850 = sst [smem:[#allocation24_spill]] %s2261_s24  ;;  %s349_s26 = sshll.u32 %s2263_s25, 4  ;;  %s2367_s26 = int_to_ptr.vmem [resolvable:$true] %s349_s26 }
  0x14   : > { %s2362_s27 = sadd.s32 4294967295, %s2261_s24   ;;  %p1675_p0 = scmp.ge.s32.totalorder %s2261_s24, 1 }
  0x15   : > { %p2828_p1 = scmp.eq.s32.totalorder %s2362_s27, 0  ;;  %p337_p2 = scmp.lt.s32.totalorder %s2261_s24, 3 }
  0x16   : > { %s2264_s29 = smov [#allocation14]   ;;  %s2853_s3 = sld [smem:[#allocation30_spill]] }
  0x17   : > { %p2369_p3 = pnand %p1675_p0, %p337_p2  ;;  %s381_s30 = sshll.u32 %s2264_s29, 4  ;;  %s2382_s30 = int_to_ptr.vmem [resolvable:$true] %s381_s30 }
  0x19   : > { %s2851_s28 = scalar_select %p2369_p3, 1, 0 }
  0x1a   : > { %p1887_p5 = pneg %p2369_p3 }
  0x1c   : > { %p2378_p6 = pnand %p1887_p5, %p2828_p1  ;;  %s1981_s16 = scalar_lea.hbm %s2853_s3, 512 }
  0x1d   : > { %p1982_p7 = scmp.ne.s32.totalorder %s2853_s3, %s1981_s16  ;;  %p1988_p11 = scmp.lt.u32.totalorder %s1981_s16, %s2853_s3 }
  0x1e   : > { %s2852_s13 = scalar_select %p2378_p6, 1, 0 }
  0x1f   : > { %p2392_p8 = pneg %p2378_p6 }
  0x21   : > { %s2854_s19 = scalar_select %p2392_p8, 1, 0 }
  0x22   : > { %p1984_p9 = pnand %p2392_p8, %p1982_p7 }
  0x24   : > { %p1985_p10 = pneg %p1984_p9 }
  0x26   : > { %p1990_p12 = pnand %p1988_p11, %p1985_p10 }
  0x28   : > { %1993 = shalt.err (!%p1990_p12)
}
  0x29   : > { %s1994_s29 = scalar_lea.vmem %s2367_s26, 512  ;;  %p2002_p5 = scmp.lt.s32.totalorder %s2367_s26, %s2367_s26 }
  0x2a   : > { %p1995_p13 = scmp.ne.s32.totalorder %s2367_s26, %s1994_s29  ;;  %p2003_p4 = scmp.lt.s32.totalorder %s1994_s29, %s1994_s29 }
  0x2c   : > { %p1997_p0 = pnand %p1995_p13, %p2392_p8  ;;  %p2004_p7 = por %p2003_p4, %p2002_p5 }
  0x2e   : > { %p1998_p2 = pneg %p1997_p0 }
  0x30   : > { %p2005_p9 = pnand %p2004_p7, %p1998_p2 }
  0x32   : > { %2008 = shalt.err (!%p2005_p9)
}
  0x33   : > { %s2820_s14 = smov 128   ;;  %s2821_s15 = smov 8  }
  0x34   : > { %1890 = dma.hbm_to_vmem [thread:$0]  (!%p2378_p6), %s2853_s3, 512, %s2367_s26, [#allocation12], %s2820_s14, %s2820_s14, %s2821_s15  }
  0x35   : > { %s2855_s7 = sld [smem:[#allocation32_spill]] }
  0x3b   : > { %s2009_s25 = scalar_lea.hbm %s2855_s7, 512 }
  0x3c   : > { %p2010_p4 = scmp.ne.s32.totalorder %s2855_s7, %s2009_s25  ;;  %p2016_p12 = scmp.lt.u32.totalorder %s2009_s25, %s2855_s7 }
  0x3e   : > { %p2012_p10 = pnand %p2010_p4, %p2392_p8 }
  0x40   : > { %p2013_p11 = pneg %p2012_p10 }
  0x42   : > { %p2018_p13 = pnand %p2016_p12, %p2013_p11 }
  0x44   : > { %2021 = shalt.err (!%p2018_p13)
}
  0x45   : > { %s2022_s26 = scalar_lea.vmem %s2382_s30, 512  ;;  %p2030_p7 = scmp.lt.s32.totalorder %s2382_s30, %s2382_s30 }
  0x46   : > { %p2023_p0 = scmp.ne.s32.totalorder %s2382_s30, %s2022_s26  ;;  %p2031_p9 = scmp.lt.s32.totalorder %s2022_s26, %s2022_s26 }
  0x48   : > { %p2025_p2 = pnand %p2023_p0, %p2392_p8  ;;  %p2032_p4 = por %p2031_p9, %p2030_p7 }
  0x4a   : > { %p2026_p5 = pneg %p2025_p2 }
  0x4c   : > { %p2033_p10 = pnand %p2032_p4, %p2026_p5 }
  0x4e   : > { %2036 = shalt.err (!%p2033_p10)
}
  0x4f   : > { %1896 = dma.hbm_to_vmem [thread:$0]  (!%p2378_p6), %s2855_s7, 512, %s2382_s30, [#allocation15], %s2820_s14, %s2820_s14, %s2821_s15  }
  0x50   : > { %s1674_s11 = sadd.s32 4294967294, %s2261_s24   ;;  %s2444_s16 = sadd.s32 1, %s2261_s24  }
  0x51   : > { %2856 = sst [smem:[#allocation25_spill]] %s2444_s16  ;;  %s38_s17 = ssub.s32 %s2261_s24, %s2444_s16 }
  0x52   : > { %s41_s18 = sadd.s32 1, %s2257_s23  ;;  %p39_p11 = scmp.eq.s32.totalorder %s38_s17, 0 }
  0x53   : > { %p48_p12 = scmp.ne.s32.totalorder %s2257_s23, %s2253_s22  ;;  %p49_p13 = scmp.eq.s32.totalorder %s2261_s24, 0 }
  0x54   : > { %p54_p0 = scmp.ne.s32.totalorder %s2253_s22, %s2249_s21  ;;  %p298_p7 = scmp.eq.s32.totalorder %s2362_s27, 1 }
  0x55   : > { %s2455_s20 = scalar_select %p39_p11, %s2257_s23, %s41_s18  }
  0x56   : > { %p50_p2 = por %p49_p13, %p48_p12  ;;  %p2459_p5 = por %p2828_p1, %p54_p0 }
  0x57   : > { %2857 = sst [smem:[#allocation26_spill]] %s2455_s20  ;;  %p304_p9 = scmp.eq.s32.totalorder %s1674_s11, 1 }
  0x58   : > { %s2858_s25 = scalar_select %p2459_p5, 1, 0 }
  0x59   : > { %p1918_p4 = scmp.lt.s32.totalorder %s2261_s24, 2  ;;  %s2822_s30 = sand.u32 1, %s2257_s23  }
  0x5a   : > { %p2466_p10 = por %p298_p7, %p48_p12  ;;  %p2470_p3 = por %p304_p9, %p54_p0 }
  0x5b   : > { %s2476_s9 = sshll.u32 %s2822_s30, 3  ;;  %s2479_s10 = sshll.u32 %s2261_s24, 7 }
  0x5c   : > { %s2859_s29 = scalar_select %p2466_p10, 1, 0 }
  0x5d   : > { %s2861_s26 = scalar_select %p2470_p3, 1, 0 }
  0x5e   : > { %2860 = sst [smem:[#allocation27_spill]] %s2859_s29  ;;  %p2481_p11 = pnand %p1918_p4, %p50_p2 }
  0x5f   : > { %2862 = sst [smem:[#allocation28_spill]] %s2861_s26  ;;  %s430_s11 = sand.u32 1, %s2261_s24  }
  0x60   : > { %s2863_s17 = scalar_select %p2481_p11, 1, 0 }
  0x61   : > { %s2864_s1 = sld [smem:[#allocation29_spill]]  ;;  %s434_s30 = scalar_lea.vmem [#allocation8], %s2476_s9 }
  0x62   : > { %s441_s3 = sshll.u32 %s434_s30, 4  ;;  %s2267_s7 = smov [#allocation13]   ;;  %s2493_s3 = int_to_ptr.vmem [resolvable:$true] %s441_s3 }
  0x63   : > { %s2495_s20 = sshll.u32 %s2267_s7, 4  ;;  %s2497_s16 = scalar_lea.sflag [#allocation9], %s430_s11  ;;  %s366_s20 = int_to_ptr.vmem [resolvable:$true] %s2495_s20 }
  0x64   : > { %p2503_p13 = pneg %p2481_p11 }
  0x66   : > { %s2865_s14 = scalar_select %p2503_p13, 1, 0 }
  0x67   : > { %s2490_s15 = scalar_lea.hbm %s2864_s1, %s2479_s10  ;;  %s2042_s24 = scalar_lea.hbm %s2864_s1, 256 }
  0x68   : > { %s2037_s26 = scalar_lea.hbm %s2490_s15, 128  ;;  %p2043_p7 = scmp.lt.u32.totalorder %s2490_s15, %s2864_s1 }
  0x69   : > { %p2038_p12 = scmp.ne.s32.totalorder %s2490_s15, %s2037_s26  ;;  %p2044_p9 = scmp.lt.u32.totalorder %s2042_s24, %s2037_s26 }
  0x6a   : > { %p2046_p1 = scmp.lt.u32.totalorder %s2037_s26, %s2490_s15 }
  0x6b   : > { %p2040_p0 = pnand %p2503_p13, %p2038_p12  ;;  %p2045_p4 = por %p2044_p9, %p2043_p7 }
  0x6d   : > { %p2041_p2 = pneg %p2040_p0  ;;  %p2047_p3 = por %p2046_p1, %p2045_p4 }
  0x6f   : > { %p2048_p10 = pnand %p2047_p3, %p2041_p2 }
  0x71   : > { %2051 = shalt.err (!%p2048_p10)
}
  0x72   : > { %s2052_s11 = scalar_lea.vmem %s2493_s3, 128  ;;  %s2268_s18 = smov [#allocation8]  }
  0x73   : > { %p2053_p12 = scmp.ne.s32.totalorder %s2493_s3, %s2052_s11  ;;  %s2057_s30 = sshll.u32 %s2268_s18, 4  ;;  %s2058_s30 = int_to_ptr.vmem [resolvable:$false] %s2057_s30 }
  0x74   : > { %s2059_s21 = scalar_lea.vmem %s2058_s30, 256  ;;  %p2060_p6 = scmp.lt.s32.totalorder %s2493_s3, %s2058_s30 }
  0x75   : > { %p2055_p0 = pnand %p2053_p12, %p2503_p13  ;;  %p2061_p8 = scmp.lt.s32.totalorder %s2059_s21, %s2052_s11 }
  0x77   : > { %p2056_p5 = pneg %p2055_p0  ;;  %p2062_p7 = por %p2061_p8, %p2060_p6 }
  0x79   : > { %p2063_p9 = pnand %p2062_p7, %p2056_p5 }
  0x7b   : > { %2066 = shalt.err (!%p2063_p9)
}
  0x7c   : > { %1906 = dma.hbm_to_vmem [thread:$0]  (!%p2481_p11), %s2490_s15, 128, %s2493_s3, %s2497_s16  }
  0x7d   : > { %s2067_s7 = scalar_lea.hbm %s2809_s5, 512  ;;  %p2866_p3 = scmp.ne.s32.totalorder %s2854_s19, 0 }
  0x7e   : > { %p2068_p1 = scmp.ne.s32.totalorder %s2809_s5, %s2067_s7  ;;  %p2074_p5 = scmp.lt.u32.totalorder %s2067_s7, %s2809_s5 }
  0x80   : > { %p2070_p6 = pnand %p2068_p1, %p2866_p3 }
  0x82   : > { %p2071_p8 = pneg %p2070_p6 }
  0x84   : > { %p2076_p10 = pnand %p2074_p5, %p2071_p8 }
  0x86   : > { %2079 = shalt.err (!%p2076_p10)
}
  0x87   : > { %s2080_s21 = scalar_lea.vmem %s366_s20, 512  ;;  %p2088_p0 = scmp.lt.s32.totalorder %s366_s20, %s366_s20 }
  0x88   : > { %p2081_p2 = scmp.ne.s32.totalorder %s366_s20, %s2080_s21  ;;  %p2089_p7 = scmp.lt.s32.totalorder %s2080_s21, %s2080_s21 }
  0x8a   : > { %p2083_p4 = pnand %p2081_p2, %p2866_p3  ;;  %p2090_p9 = por %p2089_p7, %p2088_p0 }
  0x8c   : > { %p2084_p12 = pneg %p2083_p4 }
  0x8e   : > { %p2091_p11 = pnand %p2090_p9, %p2084_p12 }
  0x90   : > { %2094 = shalt.err (!%p2091_p11)
}
  0x91   : > { %p2867_p1 = scmp.ne.s32.totalorder %s2852_s13, 0  ;;  %s2868_s1 = smov 8  }
  0x92   : > { %s2869_s3 = smov 128   ;;  %s2269_s26 = smov [#allocation16]  }
  0x93   : > { %1893 = dma.hbm_to_vmem [thread:$0]  (!%p2867_p1), %s2809_s5, 512, %s366_s20, [#allocation12], %s2869_s3, %s2869_s3, %s2868_s1  }
  0x94   : > { %s395_s7 = sshll.u32 %s2269_s26, 4  ;;  %s2095_s30 = scalar_lea.hbm %s2812_s8, 16  ;;  %s396_s7 = int_to_ptr.vmem [resolvable:$true] %s395_s7 }
  0x95   : > { %p2096_p11 = scmp.ne.s32.totalorder %s2812_s8, %s2095_s30  ;;  %p2102_p5 = scmp.lt.u32.totalorder %s2095_s30, %s2812_s8 }
  0x97   : > { %p2098_p6 = pnand %p2096_p11, %p2866_p3 }
  0x99   : > { %p2099_p8 = pneg %p2098_p6 }
  0x9b   : > { %p2104_p10 = pnand %p2102_p5, %p2099_p8 }
  0x9d   : > { %2107 = shalt.err (!%p2104_p10)
}
  0x9e   : > { %s2108_s20 = scalar_lea.vmem %s396_s7, 16  ;;  %s2115_s1 = scalar_lea.vmem %s396_s7, 32 }
  0x9f   : > { %p2109_p2 = scmp.ne.s32.totalorder %s396_s7, %s2108_s20  ;;  %p2116_p0 = scmp.lt.s32.totalorder %s396_s7, %s396_s7 }
  0xa0   : > { %p2117_p7 = scmp.lt.s32.totalorder %s2115_s1, %s2108_s20 }
  0xa1   : > { %p2111_p4 = pnand %p2109_p2, %p2866_p3 }
  0xa2   : > { %p2118_p9 = por %p2117_p7, %p2116_p0 }
  0xa3   : > { %p2112_p12 = pneg %p2111_p4 }
  0xa5   : > { %p2119_p13 = pnand %p2118_p9, %p2112_p12 }
  0xa7   : > { %2122 = shalt.err (!%p2119_p13)
}
  0xa8   : > { %1899 = dma.hbm_to_vmem [thread:$0]  (!%p2867_p1), %s2812_s8, 16, %s396_s7, [#allocation15]  }
  0xa9   : > { %s2571_s19 = scalar_lea.hbm %s2804_s0, %s2479_s10  ;;  %s416_s15 = scalar_lea.vmem [#allocation5], %s2476_s9 }
  0xaa   : > { %s423_s24 = sshll.u32 %s416_s15, 4  ;;  %s2870_s13 = sand.u32 1, %s2257_s23   ;;  %s424_s24 = int_to_ptr.vmem [resolvable:$true] %s423_s24 }
  0xab   : > { %s413_s26 = scalar_lea.sflag [#allocation6], %s2870_s13  ;;  %s2123_s18 = scalar_lea.hbm %s2571_s19, 128 }
  0xac   : > { %p2124_p13 = scmp.ne.s32.totalorder %s2571_s19, %s2123_s18  ;;  %p2871_p3 = scmp.ne.s32.totalorder %s2865_s14, 0 }
  0xad   : > { %s2128_s30 = scalar_lea.hbm %s2804_s0, 256  ;;  %p2129_p1 = scmp.lt.u32.totalorder %s2571_s19, %s2804_s0 }
  0xae   : > { %p2126_p11 = pnand %p2124_p13, %p2871_p3  ;;  %p2130_p8 = scmp.lt.u32.totalorder %s2128_s30, %s2123_s18 }
  0xaf   : > { %p2132_p10 = scmp.lt.u32.totalorder %s2123_s18, %s2571_s19 }
  0xb0   : > { %p2127_p6 = pneg %p2126_p11  ;;  %p2131_p5 = por %p2130_p8, %p2129_p1 }
  0xb2   : > { %p2133_p2 = por %p2132_p10, %p2131_p5 }
  0xb4   : > { %p2134_p4 = pnand %p2133_p2, %p2127_p6 }
  0xb6   : > { %2137 = shalt.err (!%p2134_p4)
}
  0xb7   : > { %s2138_s1 = scalar_lea.vmem %s424_s24, 128  ;;  %s2270_s29 = smov [#allocation5]  }
  0xb8   : > { %p2139_p12 = scmp.ne.s32.totalorder %s424_s24, %s2138_s1  ;;  %s2143_s3 = sshll.u32 %s2270_s29, 4  ;;  %s2144_s3 = int_to_ptr.vmem [resolvable:$false] %s2143_s3 }
  0xb9   : > { %s2145_s4 = scalar_lea.vmem %s2144_s3, 256  ;;  %p2146_p9 = scmp.lt.s32.totalorder %s424_s24, %s2144_s3 }
  0xba   : > { %p2141_p0 = pnand %p2139_p12, %p2871_p3  ;;  %p2147_p13 = scmp.lt.s32.totalorder %s2145_s4, %s2138_s1 }
  0xbc   : > { %p2142_p7 = pneg %p2141_p0  ;;  %p2148_p11 = por %p2147_p13, %p2146_p9 }
  0xbe   : > { %p2149_p1 = pnand %p2148_p11, %p2142_p7 }
  0xc0   : > { %2152 = shalt.err (!%p2149_p1)
}
  0xc1   : > { %p2872_p8 = scmp.ne.s32.totalorder %s2863_s17, 0  ;;  %s2597_s13 = scalar_lea.hbm %s2806_s2, %s2479_s10 }
  0xc2   : > { %s452_s18 = scalar_lea.vmem [#allocation10], %s2476_s9  ;;  %s2153_s11 = scalar_lea.hbm %s2597_s13, 128 }
  0xc3   : > { %1903 = dma.hbm_to_vmem [thread:$0]  (!%p2872_p8), %s2571_s19, 128, %s424_s24, %s413_s26  }
  0xc4   : > { %s459_s7 = sshll.u32 %s452_s18, 4  ;;  %p2154_p6 = scmp.ne.s32.totalorder %s2597_s13, %s2153_s11  ;;  %s460_s7 = int_to_ptr.vmem [resolvable:$true] %s459_s7 }
  0xc5   : > { %s2158_s19 = scalar_lea.hbm %s2806_s2, 256  ;;  %p2159_p2 = scmp.lt.u32.totalorder %s2597_s13, %s2806_s2 }
  0xc6   : > { %p2156_p5 = pnand %p2154_p6, %p2871_p3  ;;  %p2160_p4 = scmp.lt.u32.totalorder %s2158_s19, %s2153_s11 }
  0xc7   : > { %p2162_p0 = scmp.lt.u32.totalorder %s2153_s11, %s2597_s13 }
  0xc8   : > { %p2157_p10 = pneg %p2156_p5  ;;  %p2161_p12 = por %p2160_p4, %p2159_p2 }
  0xca   : > { %p2163_p7 = por %p2162_p0, %p2161_p12 }
  0xcc   : > { %p2164_p9 = pnand %p2163_p7, %p2157_p10 }
  0xce   : > { %2167 = shalt.err (!%p2164_p9)
}
  0xcf   : > { %s2168_s9 = scalar_lea.vmem %s460_s7, 128  ;;  %s2271_s10 = smov [#allocation10]  }
  0xd0   : > { %p2169_p13 = scmp.ne.s32.totalorder %s460_s7, %s2168_s9  ;;  %s2173_s20 = sshll.u32 %s2271_s10, 4  ;;  %s2174_s20 = int_to_ptr.vmem [resolvable:$false] %s2173_s20 }
  0xd1   : > { %s2175_s1 = scalar_lea.vmem %s2174_s20, 256  ;;  %p2176_p6 = scmp.lt.s32.totalorder %s460_s7, %s2174_s20 }
  0xd2   : > { %p2171_p11 = pnand %p2169_p13, %p2871_p3  ;;  %p2177_p5 = scmp.lt.s32.totalorder %s2175_s1, %s2168_s9 }
  0xd4   : > { %p2172_p1 = pneg %p2171_p11  ;;  %p2178_p8 = por %p2177_p5, %p2176_p6 }
  0xd6   : > { %p2179_p2 = pnand %p2178_p8, %p2172_p1 }
  0xd8   : > { %2182 = shalt.err (!%p2179_p2)
}
  0xd9   : > { %p2873_p4 = scmp.ne.s32.totalorder %s2863_s17, 0  ;;  %p2874_p10 = scmp.ne.s32.totalorder %s2851_s28, 0 }
  0xda   : > { %s2621_s14 = sand.u32 (!%p2874_p10), 1, %s2253_s22   ;;  %p2875_p3 = scmp.ne.s32.totalorder (!%p2874_p10), %s2858_s25, 0 }
  0xdb   : > { %1909 = dma.hbm_to_vmem [thread:$0]  (!%p2873_p4), %s2597_s13, 128, %s460_s7, %s2497_s16  }
  0xdc   : > { %468 = sbr.rel (%p2874_p10) target bundleno = 1998 (0x7ce), region = 64  ;;  %s2624_s29 = sshll.u32 (!%p2874_p10), %s2621_s14, 3 }
  0xdd   : > { %s471_s3 = scalar_lea.sflag (!%p2874_p10), [#allocation6], %s2621_s14  ;;  %s474_s4 = scalar_lea.vmem (!%p2874_p10), [#allocation5], %s2624_s29 }
  0xe3   : > { %2228 = dma.done.wait (%p2875_p3), %s471_s3, 128  }
  0xe4   : > { %2230 = vsyncadd (%p2875_p3), %s471_s3, 4294967168  ;;  %s479_s28 = sand.u32 1, %s2362_s27   ;;  %s483_s17 = scalar_lea.vmem [#allocation8], %s2624_s29 }
  0xe5   : > { %s480_s16 = scalar_lea.sflag [#allocation9], %s479_s28 }
  0xe6   : > { %2232 = dma.done.wait (%p2875_p3), %s480_s16, 256  }
  0xe7   : > { %2234 = vsyncadd (%p2875_p3), %s480_s16, 4294967040  ;;  %s492_s12 = scalar_lea.vmem [#allocation10], %s2624_s29  ;;  %p2876_p8 = scmp.eq.s32.totalorder %s2362_s27, 0 }
  0xe9   : > { %2236 = dma.done.wait (%p2876_p8), [#allocation12], 1024   ;;  %p2877_p12 = pmov %p2876_p8 }
  0xea   : > { %p2878_p0 = pmov %p2876_p8 }
  0xeb   : > { %2238 = vsyncadd (%p2877_p12), [#allocation12], 4294966272 }
  0xec   : > { %2240 = dma.done.wait (%p2878_p0), [#allocation15], 528   ;;  %p2879_p7 = pmov %p2878_p0 }
  0xed   : > { %v2272_v0 = vmov 0.0|0.0   ;;  %vm2273_vm0 = vmmov 0   ;;  %v2274_v1 = vmov 0.0   ;;  %v658_v2 = vld [vmem:[#allocation13] sm:$0xff]  ;;  %v659_v3 = vld [vmem:[#allocation13 + $0x8] sm:$0xff]  ;;  %v660_v7 = vld [vmem:[#allocation13 + $0x10] sm:$0xff] }
  0xee   : > { %2242 = vsyncadd (%p2879_p7), [#allocation15], 4294966768  ;;  %1851 = vmatprep.subr.bf16.mxu1 %v2272_v0  ;;  %1845 = vmatprep.subr.bf16.mxu0 %v2272_v0  ;;  %v571_v4 = vld [vmem:[#allocation11] sm:$0xff]  ;;  %v1852_v5 = vpack.c.bf16 %v659_v3, %v658_v2  ;;  %v572_v6 = vld [vmem:[#allocation11 + $0x8] sm:$0xff]  ;;  %vm582_vm1 = vcmask 261120   ;;  %s2880_s7 = sld [smem:[#allocation31_spill]] }
  0xef   : > { %1779 = vmatprep.mubr.msk.f32.mxu1 %vm2273_vm0, %v2274_v1  ;;  %1768 = vmatprep.mubr.msk.f32.mxu0 %vm2273_vm0, %v2274_v1  ;;  %v661_v8 = vld [vmem:[#allocation13 + $0x18] sm:$0xff]  ;;  %v1846_v9 = vpack.c.bf16 %v572_v6, %v571_v4  ;;  %v573_v10 = vld [vmem:[#allocation11 + $0x10] sm:$0xff]  ;;  %v744_v14 = vld [vmem:[#allocation14] sm:$0xff]  ;;  %vm931_vm2 = vcmask 1040384   ;;  %vm911_vm3 = vcmask 9216   ;;  %p564_p9 = scmp.lt.s32.totalorder %s2362_s27, 1 }
  0xf0   : > { %v574_v11 = vld [vmem:[#allocation11 + $0x18] sm:$0xff]  ;;  %1853 = vmatpush3.bf16.msra.mxu1 %v1852_v5  ;;  %v1855_v12 = vpack.c.bf16 %v661_v8, %v660_v7  ;;  %v745_v15 = vld [vmem:[#allocation14 + $0x8] sm:$0xff]  ;;  %v746_v19 = vld [vmem:[#allocation14 + $0x10] sm:$0xff]  ;;  %s2881_s24 = sld [smem:[#allocation36_spill]]  ;;  %vm927_vm4 = vcmask 15360   ;;  %s2882_s20 = sld [smem:[#allocation33_spill]] }
  0xf1   : > { %1847 = vmatpush3.bf16.msra.mxu0 %v1846_v9  ;;  %1854 = vmatprep.subr.bf16.mxu1 %v2272_v0  ;;  %v1849_v13 = vpack.c.bf16 %v574_v11, %v573_v10  ;;  %v657_v16 = vld [vmem:[%s483_s17] sm:$0xff]  ;;  %v570_v17 = vld [vmem:[%s474_s4] sm:$0xff]  ;;  %v1858_v18 = vpack.c.bf16 %v745_v15, %v744_v14  ;;  %s565_s11 = scalar_select %p564_p9, %s2362_s27, 1 }
  0xf2   : > { %1848 = vmatprep.subr.bf16.mxu0 %v2272_v0  ;;  %v747_v20 = vld [vmem:[#allocation14 + $0x18] sm:$0xff]  ;;  %v1702_v35 = vld [vmem:[#allocation16] ss:$0 sm:$0xff]  ;;  %s2883_s15 = sld [smem:[#allocation34_spill]]  ;;  %s2884_s13 = sld [smem:[#allocation27_spill]] }
  0xf3   : > { %v1861_v21 = vpack.c.bf16 %v747_v20, %v746_v19  ;;  %v743_v22 = vld [vmem:[%s492_s12] sm:$0xff]  ;;  %s1725_s30 = sshll.u32 %s565_s11, 3  ;;  %s1722_s18 = sshll.u32 %s2362_s27, 7 }
  0xf4   : > { %1856 = vmatpush3.bf16.msra.mxu1 %v1855_v12  ;;  %v1700_v23 = vld [vmem:[%s2810_s6] ss:$0 sm:$0xff]  ;;  %s2885_s19 = sld [smem:[#allocation35_spill]]  ;;  %s1477_s27 = scalar_lea.sflag [#allocation7], %s2621_s14 }
  0xf5   : > { %1850 = vmatpush3.bf16.msra.mxu0 %v1849_v13  ;;  %1793 = vmatprep.subr.mxu1 %v2274_v1  ;;  %v1698_v24 = vld [vmem:[%s2880_s7] ss:$0 sm:$0xff]  ;;  %s556_s7 = scalar_lea.vmem [#allocation17], %s2624_s29 }
  0xf6   : > { %1857 = vmatprep.subr.bf16.mxu0 %v2272_v0  ;;  %s2700_s26 = scalar_lea.vmem %s2881_s24, %s1725_s30  ;;  %s1495_s11 = sshll.u32 %s556_s7, 4  ;;  %s2761_s11 = int_to_ptr.vmem [resolvable:$true] %s1495_s11 }
  0xf7   : > { %1780 = vmatmul.mubr.msk.f32.vlgmr.msra.gmra.mrb[0].mxu1 %vm582_vm1, %v657_v16  ;;  %s2183_s29 = scalar_lea.vmem %s2761_s11, 128 }
  0xf8   : > { %1769 = vmatmul.mubr.msk.f32.vlgmr.msra.gmra.mrb[0].mxu0 %vm582_vm1, %v570_v17  ;;  %1795 = vmatprep.mubr.msk.f32.mxu1 %vm2273_vm0, %v2274_v1  ;;  %p2184_p13 = scmp.ne.s32.totalorder %s2761_s11, %s2183_s29  ;;  %p2886_p11 = scmp.ne.s32.totalorder %s2884_s13, 0 }
  0xf9   : > { %1859 = vmatpush3.bf16.msra.mxu0 %v1858_v18  ;;  %1790 = vmatprep.mubr.msk.f32.mxu0 %vm2273_vm0, %v2274_v1 }
  0xfa   : > { %1860 = vmatprep.subr.bf16.mxu0 %v2272_v0  ;;  %s2759_s24 = scalar_lea.hbm %s2885_s19, %s1722_s18  ;;  %p2185_p1 = pnand %p2184_p13, %p2886_p11 }
  0xfc   : > { %p2186_p6 = pneg %p2185_p1 }
  0xfd   : > { %1862 = vmatpush3.bf16.msra.mxu0 %v1861_v21 }
  0xfe   : > { %1804 = vmatprep.subr.mxu0 %v2274_v1 }
 0x100   : > { %1791 = vmatmul.mubr.msk.f32.vlgmr.msra.gmra.mrb[2].mxu0 %vm582_vm1, %v743_v22 }
 0x101   : > { %1806 = vmatprep.mubr.msk.f32.mxu0 %vm2273_vm0, %v2274_v1 }
 0x1ca   : > { %v738_v25 = vpop.f32.mrb[0].mxu1 }
 0x1cb   : > { %v739_v26 = vadd.f32 %v1700_v23, %v738_v25  ;;  %v1781_v27 = vpop.f32.mrb[1].mxu1  ;;  %v652_v28 = vpop.f32.mrb[0].mxu0 }
 0x1cc   : > { %v653_v29 = vadd.f32 %v1698_v24, %v652_v28  ;;  %v1770_v30 = vpop.f32.mrb[1].mxu0 }
 0x1cd   : > { %742 = vst.msk [vmem:[#allocation3] sm:$0xff] %vm582_vm1, %v739_v26 }
 0x1ce   : > { %656 = vst.msk [vmem:[#allocation2] sm:$0xff] %vm582_vm1, %v653_v29 }
 0x1d3   : > { %v824_v36 = vpop.f32.mrb[2].mxu0 }
 0x1d4   : > { %v830_v31 = vld [vmem:[#allocation3] ss:$4 sm:$0x3]  ;;  %v979_v32 = vld [vmem:[#allocation3 + $0x1] ss:$4 sm:$0x3]  ;;  %v825_v37 = vadd.f32 %v1702_v35, %v824_v36 }
 0x1d5   : > { %1794 = vmatpush3.xpose.msk.msra.mxu1 %vm582_vm1, %v830_v31  ;;  %1805 = vmatpush3.xpose.msk.msra.mxu0 %vm582_vm1, %v979_v32  ;;  %v829_v33 = vld [vmem:[#allocation2] ss:$4 sm:$0x3]  ;;  %v977_v34 = vld [vmem:[#allocation2 + $0x1] ss:$4 sm:$0x3] }
 0x1d6   : > { %1798 = vmatprep.subr.bf16.mxu1 %v2274_v1  ;;  %1809 = vmatprep.subr.bf16.mxu0 %v2274_v1  ;;  %v1792_v38 = vpop.f32.mrb[3].mxu0  ;;  %828 = vst.msk [vmem:[#allocation4] sm:$0xff] %vm582_vm1, %v825_v37  ;;  %v1126_v9 = vld [vmem:[#allocation3 + $0x2] ss:$4 sm:$0x3] }
 0x1d7   : > { %v1273_v12 = vld [vmem:[#allocation3 + $0x3] ss:$4 sm:$0x3]  ;;  %v1124_v15 = vld [vmem:[#allocation2 + $0x2] ss:$4 sm:$0x3] }
 0x1d8   : > { %1796 = vmatmul.mubr.msk.f32.vlgmr.msra.gmra.mrb[2].mxu1 %vm582_vm1, %v829_v33  ;;  %1807 = vmatmul.mubr.msk.f32.vlgmr.msra.gmra.mrb[4].mxu0 %vm582_vm1, %v977_v34  ;;  %v1271_v18 = vld [vmem:[#allocation2 + $0x3] ss:$4 sm:$0x3] }
 0x1d9   : > { %1800 = vmatprep.mubr.msk.bf16.mxu1 %vm2273_vm0, %v2274_v1  ;;  %1811 = vmatprep.mubr.msk.bf16.mxu0 %vm2273_vm0, %v2274_v1 }
 0x1dd   : > { %v831_v39 = vld [vmem:[#allocation4] ss:$4 sm:$0x3]  ;;  %v981_v41 = vld [vmem:[#allocation4 + $0x1] ss:$4 sm:$0x3] }
 0x1de   : > { %v926_v40 = vpack.c.bf16 %v831_v39, %v831_v39  ;;  %v1075_v42 = vpack.c.bf16 %v981_v41, %v981_v41  ;;  %v1128_v10 = vld [vmem:[#allocation4 + $0x2] ss:$4 sm:$0x3]  ;;  %v1275_v14 = vld [vmem:[#allocation4 + $0x3] ss:$4 sm:$0x3] }
 0x1df   : > { %v1222_v13 = vpack.c.bf16 %v1128_v10, %v1128_v10  ;;  %v1369_v17 = vpack.c.bf16 %v1275_v14, %v1275_v14 }
 0x1e0   : > { %v933_v43 = vsel %vm931_vm2, %v926_v40, 0  ;;  %v1080_v44 = vsel %vm931_vm2, %v1075_v42, 0 }
 0x1e1   : > { %1799 = vmatpush3.bf16.msra.mxu1 %v933_v43  ;;  %1810 = vmatpush3.bf16.msra.mxu0 %v1080_v44  ;;  %v1227_v16 = vsel %vm931_vm2, %v1222_v13, 0  ;;  %v1374_v19 = vsel %vm931_vm2, %v1369_v17, 0 }
 0x1e2   : > { %1815 = vmatprep.subr.mxu1 %v2274_v1  ;;  %1826 = vmatprep.subr.mxu0 %v2274_v1 }
 0x2ab   : > { %v904_v45 = vpop.f32.mrb[2].mxu1  ;;  %v1054_v46 = vpop.f32.mrb[4].mxu0 }
 0x2ac   : > { %v909_v47 = vmul.f32 0.35355338, %v904_v45  ;;  %v1058_v48 = vmul.f32 0.35355338, %v1054_v46  ;;  %v1797_v49 = vpop.f32.mrb[3].mxu1  ;;  %v1808_v50 = vpop.f32.mrb[5].mxu0 }
 0x2ae   : > { %v910_v51 = vfloor.f32 %v909_v47  ;;  %v1059_v52 = vfloor.f32 %v1058_v48 }
 0x2b0   : > { %v912_v53 = vsel %vm911_vm3, %v910_v51, -inf  ;;  %v1060_v54 = vsel %vm911_vm3, %v1059_v52, -inf }
 0x2b1   : > { %913 = vmax.xlane.f32.xlu0 %v912_v53 }
 0x2b5   : > { %1061 = vmax.xlane.f32.xlu0 %v1060_v54 }
 0x33e   : > { %v914_v55 = vpop.xlane.xlu0 %913 }
 0x33f   : > { %v915_v56 = vsub.f32 %v910_v51, %v914_v55 }
 0x341   : > { %v916_v57 = vmul.f32 1.442695, %v915_v56  ;;  %v1419_v56 = vld [vmem:[%s2882_s20] sm:$0xff] }
 0x342   : > { %v1062_v58 = vpop.xlane.xlu0 %1061 }
 0x343   : > { %1965 = vpow2.f32 %v916_v57  ;;  %v1063_v59 = vsub.f32 %v1059_v52, %v1062_v58  ;;  %v1420_v57 = vld [vmem:[%s2882_s20 + $0x8] sm:$0xff]  ;;  %v1421_v58 = vld [vmem:[%s2882_s20 + $0x10] sm:$0xff] }
 0x345   : > { %v1064_v60 = vmul.f32 1.442695, %v1063_v59  ;;  %v1423_v59 = vpack.c.bf16 %v1420_v57, %v1419_v56 }
 0x347   : > { %1967 = vpow2.f32 %v1064_v60  ;;  %v1422_v60 = vld [vmem:[%s2882_s20 + $0x18] sm:$0xff] }
 0x34d   : > { %v1966_v61 = vpop.eup %1965 }
 0x34e   : > { %v918_v62 = vsel %vm911_vm3, %v1966_v61, 0.0 }
 0x34f   : > { %919 = vadd.xlane.f32.xlu1 %v918_v62 }
 0x351   : > { %v1968_v63 = vpop.eup %1967 }
 0x352   : > { %v1066_v0 = vsel %vm911_vm3, %v1968_v63, 0.0 }
 0x353   : > { %1067 = vadd.xlane.f32.xlu1 %v1066_v0 }
 0x3dc   : > { %v920_v2 = vpop.xlane.xlu1 %919 }
 0x3dd   : > { %1969 = vrcp.f32 %v920_v2 }
 0x3e0   : > { %v1068_v3 = vpop.xlane.xlu1 %1067 }
 0x3e1   : > { %1971 = vrcp.f32 %v1068_v3 }
 0x3e7   : > { %v1970_v4 = vpop.eup %1969 }
 0x3e8   : > { %v923_v5 = vmul.f32 %v1970_v4, %v1966_v61  ;;  %v1424_v61 = vpack.c.bf16 %v1422_v60, %v1421_v58 }
 0x3ea   : > { %924 = vst.msk [vmem:[%s2700_s26] sm:$0x3] %vm911_vm3, %v923_v5  ;;  %v925_v6 = vpack.c.bf16 %v923_v5, %v923_v5 }
 0x3eb   : > { %v1972_v7 = vpop.eup %1971 }
 0x3ec   : > { %v1071_v8 = vmul.f32 %v1972_v7, %v1968_v63  ;;  %1801 = vmatmul.mubr.msk.bf16.vlgmr.msra.gmra.mrb[4].mxu1 %vm927_vm4, %v925_v6 }
 0x3ed   : > { %1816 = vmatpush3.xpose.msk.msra.mxu1 %vm582_vm1, %v1126_v9  ;;  %1817 = vmatprep.mubr.msk.f32.mxu1 %vm2273_vm0, %v2274_v1 }
 0x3ee   : > { %1709 = vst.msk [vmem:[%s2700_s26 + $0x2] sm:$0x3] %vm911_vm3, %v1071_v8  ;;  %v1074_v11 = vpack.c.bf16 %v1071_v8, %v1071_v8  ;;  %1820 = vmatprep.subr.bf16.mxu1 %v2274_v1 }
 0x3f0   : > { %1812 = vmatmul.mubr.msk.bf16.vlgmr.msra.gmra.mrb[8].mxu0 %vm927_vm4, %v1074_v11 }
 0x3f1   : > { %1827 = vmatpush3.xpose.msk.msra.mxu0 %vm582_vm1, %v1273_v12  ;;  %1828 = vmatprep.mubr.msk.f32.mxu0 %vm2273_vm0, %v2274_v1 }
 0x3f2   : > { %1831 = vmatprep.subr.bf16.mxu0 %v2274_v1 }
 0x3f4   : > { %1818 = vmatmul.mubr.msk.f32.vlgmr.msra.gmra.mrb[8].mxu1 %vm582_vm1, %v1124_v15 }
 0x3f5   : > { %1821 = vmatpush3.bf16.msra.mxu1 %v1227_v16  ;;  %1822 = vmatprep.mubr.msk.bf16.mxu1 %vm2273_vm0, %v2274_v1 }
 0x3f6   : > { %1837 = vmatprep.subr.bf16.mxu1 %v2274_v1 }
 0x3f8   : > { %1829 = vmatmul.mubr.msk.f32.vlgmr.msra.gmra.mrb[6].mxu0 %vm582_vm1, %v1271_v18 }
 0x3f9   : > { %1832 = vmatpush3.bf16.msra.mxu0 %v1374_v19  ;;  %1833 = vmatprep.mubr.msk.bf16.mxu0 %vm2273_vm0, %v2274_v1 }
 0x4bf   : > { %v969_v20 = vpop.f32.mrb[4].mxu1 }
 0x4c0   : > { %975 = vst [vmem:[#allocation2] ss:$4 sm:$0x3] %v969_v20  ;;  %v1802_v21 = vpop.f32.mrb[5].mxu1 }
 0x4c1   : > { %v972_v22 = vpop.f32.mrb[6].mxu1 }
 0x4c2   : > { %v1803_v23 = vpop.f32.mrb[7].mxu1 }
 0x4c3   : > { %v1116_v24 = vpop.f32.mrb[8].mxu0 }
 0x4c4   : > { %1122 = vst [vmem:[#allocation2 + $0x1] ss:$4 sm:$0x3] %v1116_v24  ;;  %v1813_v25 = vpop.f32.mrb[9].mxu0 }
 0x4c5   : > { %v1119_v26 = vpop.f32.mrb[10].mxu0 }
 0x4c6   : > { %v1814_v27 = vpop.f32.mrb[11].mxu0 }
 0x4c7   : > { %v1201_v28 = vpop.f32.mrb[8].mxu1 }
 0x4c8   : > { %v1205_v29 = vmul.f32 0.35355338, %v1201_v28  ;;  %v1819_v30 = vpop.f32.mrb[9].mxu1 }
 0x4ca   : > { %v1206_v31 = vfloor.f32 %v1205_v29 }
 0x4cb   : > { %v1348_v32 = vpop.f32.mrb[6].mxu0 }
 0x4cc   : > { %v1352_v33 = vmul.f32 0.35355338, %v1348_v32  ;;  %v1830_v34 = vpop.f32.mrb[7].mxu0  ;;  %v1207_v35 = vsel %vm911_vm3, %v1206_v31, -inf }
 0x4cd   : > { %1208 = vmax.xlane.f32.xlu0 %v1207_v35 }
 0x4ce   : > { %v1353_v36 = vfloor.f32 %v1352_v33 }
 0x4d0   : > { %v1354_v37 = vsel %vm911_vm3, %v1353_v36, -inf }
 0x4d1   : > { %1355 = vmax.xlane.f32.xlu1 %v1354_v37 }
 0x55a   : > { %v1209_v38 = vpop.xlane.xlu0 %1208 }
 0x55b   : > { %v1210_v39 = vsub.f32 %v1206_v31, %v1209_v38 }
 0x55d   : > { %v1211_v40 = vmul.f32 1.442695, %v1210_v39 }
 0x55e   : > { %v1356_v41 = vpop.xlane.xlu1 %1355 }
 0x55f   : > { %1973 = vpow2.f32 %v1211_v40  ;;  %v1357_v42 = vsub.f32 %v1353_v36, %v1356_v41 }
 0x561   : > { %v1358_v43 = vmul.f32 1.442695, %v1357_v42 }
 0x563   : > { %1975 = vpow2.f32 %v1358_v43 }
 0x569   : > { %v1974_v44 = vpop.eup %1973 }
 0x56a   : > { %v1213_v45 = vsel %vm911_vm3, %v1974_v44, 0.0 }
 0x56b   : > { %1214 = vadd.xlane.f32.xlu0 %v1213_v45 }
 0x56d   : > { %v1976_v46 = vpop.eup %1975 }
 0x56e   : > { %v1360_v47 = vsel %vm911_vm3, %v1976_v46, 0.0 }
 0x56f   : > { %1361 = vadd.xlane.f32.xlu1 %v1360_v47 }
 0x5f8   : > { %v1215_v48 = vpop.xlane.xlu0 %1214 }
 0x5f9   : > { %1977 = vrcp.f32 %v1215_v48 }
 0x5fc   : > { %v1362_v49 = vpop.xlane.xlu1 %1361 }
 0x5fd   : > { %1979 = vrcp.f32 %v1362_v49 }
 0x603   : > { %v1978_v50 = vpop.eup %1977 }
 0x604   : > { %v1218_v51 = vmul.f32 %v1978_v50, %v1974_v44 }
 0x606   : > { %1713 = vst.msk [vmem:[%s2700_s26 + $0x4] sm:$0x3] %vm911_vm3, %v1218_v51  ;;  %v1221_v52 = vpack.c.bf16 %v1218_v51, %v1218_v51 }
 0x607   : > { %v1980_v53 = vpop.eup %1979 }
 0x608   : > { %v1365_v54 = vmul.f32 %v1980_v53, %v1976_v46  ;;  %1823 = vmatmul.mubr.msk.bf16.vlgmr.msra.gmra.mrb[12].mxu1 %vm927_vm4, %v1221_v52 }
 0x609   : > { %1841 = vmatprep.mubr.msk.bf16.mxu1 %vm2273_vm0, %v2274_v1  ;;  %1838 = vmatpush3.bf16.msra.mxu1 %v1423_v59 }
 0x60a   : > { %1717 = vst.msk [vmem:[%s2700_s26 + $0x6] sm:$0x3] %vm911_vm3, %v1365_v54  ;;  %v1368_v55 = vpack.c.bf16 %v1365_v54, %v1365_v54  ;;  %1839 = vmatprep.subr.bf16.mxu1 %v2274_v1  ;;  %v1719_v1 = vld [vmem:[%s2883_s15] ss:$0 sm:$0xff]  ;;  %s2275_s26 = smov [#allocation17]  }
 0x60b   : > { %s2187_s9 = sshll.u32 %s2275_s26, 4  ;;  %s2188_s9 = int_to_ptr.vmem [resolvable:$false] %s2187_s9 }
 0x60c   : > { %1834 = vmatmul.mubr.msk.bf16.vlgmr.msra.gmra.mrb[12].mxu0 %vm927_vm4, %v1368_v55  ;;  %s2189_s10 = scalar_lea.vmem %s2188_s9, 256  ;;  %p2190_p5 = scmp.lt.s32.totalorder %s2761_s11, %s2188_s9 }
 0x60d   : > { %1840 = vmatpush3.bf16.msra.mxu1 %v1424_v61  ;;  %p2191_p2 = scmp.lt.s32.totalorder %s2189_s10, %s2183_s29 }
 0x60f   : > { %p2192_p4 = por %p2191_p2, %p2190_p5 }
 0x611   : > { %p2193_p10 = pnand %p2192_p4, %p2186_p6 }
 0x6db   : > { %v1263_v62 = vpop.f32.mrb[12].mxu1 }
 0x6dc   : > { %1269 = vst [vmem:[#allocation2 + $0x2] ss:$4 sm:$0x3] %v1263_v62  ;;  %v1824_v63 = vpop.f32.mrb[13].mxu1 }
 0x6dd   : > { %v1266_v0 = vpop.f32.mrb[14].mxu1 }
 0x6de   : > { %v1825_v2 = vpop.f32.mrb[15].mxu1 }
 0x6df   : > { %v1410_v3 = vpop.f32.mrb[12].mxu0 }
 0x6e0   : > { %1416 = vst [vmem:[#allocation2 + $0x3] ss:$4 sm:$0x3] %v1410_v3  ;;  %v1835_v4 = vpop.f32.mrb[13].mxu0 }
 0x6e1   : > { %v1413_v5 = vpop.f32.mrb[14].mxu0 }
 0x6e2   : > { %v1836_v6 = vpop.f32.mrb[15].mxu0 }
 0x6e7   : > { %v1417_v7 = vld [vmem:[#allocation2] sm:$0xff] }
 0x6e8   : > { %v1418_v8 = vpack.c.bf16 %v1417_v7, %v1417_v7 }
 0x6ea   : > { %1842 = vmatmul.mubr.msk.bf16.vlgmr.msra.gmra.mrb[16].mxu1 %vm582_vm1, %v1418_v8 }
 0x7bd   : > { %v1469_v9 = vpop.f32.mrb[16].mxu1 }
 0x7be   : > { %v1470_v10 = vadd.f32 %v1719_v1, %v1469_v9  ;;  %v1843_v11 = vpop.f32.mrb[17].mxu1 }
 0x7bf   : > { %v1472_v12 = vpop.f32.mrb[18].mxu1 }
 0x7c0   : > { %v1844_v13 = vpop.f32.mrb[19].mxu1  ;;  %1475 = vst.msk [vmem:[%s556_s7] sm:$0xff] %vm582_vm1, %v1470_v10 }
 0x7c1   : > { %2196 = shalt.err (!%p2193_p10)
}
 0x7c2   : > { %s2197_s14 = scalar_lea.hbm %s2759_s24, 128  ;;  %s2201_s4 = scalar_lea.hbm %s2885_s19, 256 }
 0x7c3   : > { %p2198_p3 = scmp.ne.s32.totalorder %s2759_s24, %s2197_s14  ;;  %p2202_p0 = scmp.lt.u32.totalorder %s2759_s24, %s2885_s19 }
 0x7c4   : > { %p2203_p7 = scmp.lt.u32.totalorder %s2201_s4, %s2197_s14  ;;  %p2205_p13 = scmp.lt.u32.totalorder %s2197_s14, %s2759_s24 }
 0x7c5   : > { %p2199_p8 = pnand %p2198_p3, %p2886_p11 }
 0x7c6   : > { %p2204_p9 = por %p2203_p7, %p2202_p0 }
 0x7c7   : > { %p2200_p12 = pneg %p2199_p8 }
 0x7c8   : > { %p2206_p1 = por %p2205_p13, %p2204_p9 }
 0x7ca   : > { %p2207_p6 = pnand %p2206_p1, %p2200_p12 }
 0x7cc   : > { %2210 = shalt.err (!%p2207_p6)
}
 0x7cd   : > { %1885 = dma.vmem_to_hbm [thread:$0]  (%p2886_p11), %s2761_s11, 128, %s2759_s24, %s1477_s27  }
 0x7ce PF: > { %s2887_s17 = sld [smem:[#allocation23_spill]]  ;;  %s2888_s12 = sld [smem:[#allocation28_spill]] }
 0x7cf   : > { %s2889_s25 = sld [smem:[#allocation24_spill]] }
 0x7d4   : > { %s1510_s15 = sand.u32 1, %s2887_s17   ;;  %p2890_p5 = scmp.ne.s32.totalorder %s2888_s12, 0 }
 0x7d5   : > { %p2891_p2 = scmp.ge.s32.totalorder %s2889_s25, 2  ;;  %s1511_s18 = scalar_lea.sflag [#allocation7], %s1510_s15 }
 0x7d7   : > { %p1911_p4 = pnand %p2891_p2, %p2890_p5 }
 0x7d9   : > { %2244 = dma.done.wait (!%p1911_p4), %s1511_s18, 128  }
 0x7da   : > { %2246 = vsyncadd (!%p1911_p4), %s1511_s18, 4294967168  ;;  %s2892_s24 = sld [smem:[#allocation25_spill]]  ;;  %s2893_s7 = sld [smem:[#allocation26_spill]] }
 0x7db   : > { %s2894_s21 = smov %s2253_s22  ;;  %s2895_s22 = smov %s2257_s23 }
 0x7e0   : > { %p31_p10 = scmp.ge.s32.totalorder %s2892_s24, 4   ;;  %s2896_s23 = smov %s2893_s7 }
 0x7e2   :  { %33 = sbr.rel (!%p31_p10) target bundleno = 18 (0x12), region = 173 }
 0x7e9   :  { %1524 = vsyncpa [#allocation6], 1 }
 0x7ea   :  { %1526 = vsyncpa [#allocation6 + $0x1], 1 }
 0x7eb   :  { %1527 = vsyncpa [#allocation9], 1 }
 0x7ec   :  { %1529 = vsyncpa [#allocation9 + $0x1], 1 }
 0x7ed   :  { %1530 = vsyncpa [#allocation12], 1 }
 0x7ee   :  { %1531 = vsyncpa [#allocation15], 1 }
 0x7ef   :  { %1532 = vsyncpa [#allocation7], 1 }
 0x7f0   :  { %1534 = vsyncpa [#allocation7 + $0x1], 1 }

</bundles_post_ra>
